<compile_context>
chip_gen: v7x
topology: tpu7x:2x2x1
jax: 0.10.0
libtpu: 0.0.40
codegen_flags: <defaults>
</compile_context>

<pallas_src>
import functools

import jax
import jax.numpy as jnp
from jax import lax
from jax.experimental import pallas as pl
from jax.experimental.pallas import tpu as pltpu

LN_EPS = 1e-5


def _round_up(x, m):
    return (x + m - 1) // m * m


def _pad_to(a, shape):
    pads = [(0, t - s) for s, t in zip(a.shape, shape)]
    return jnp.pad(a, pads)


# ------------------------------ hardware plan --------------------------------

def _tpu_info():
    """Best-effort HW query -> (vmem_capacity_bytes, feature_pad, is_v7x, is_v5e)."""
    kind = ""
    try:
        kind = jax.devices()[0].device_kind.lower()
    except Exception:
        pass
    is_v7x = "v7" in kind
    is_v6 = "v6" in kind
    is_v5e = ("v5" in kind) and ("v5p" not in kind)
    vmem_cap = (64 if is_v7x else 128) * 1024 * 1024
    try:
        info = pltpu.get_tpu_info()
        vmem_cap = int(getattr(info, "vmem_capacity_bytes", vmem_cap)) or vmem_cap
    except Exception:
        pass
    # v6e / v7x have a 256x256 MXU -> pad feature dims to 256 there, 128 otherwise.
    feature_pad = 256 if (is_v6 or is_v7x) else 128
    return vmem_cap, feature_pad, is_v7x, is_v5e


def _plan(B, K, H, N, L):
    """Pick padding, batch tile, weight residency and a VMEM limit."""
    vmem_cap, feat_pad, is_v7x, is_v5e = _tpu_info()
    F32, BF16 = 4, 2
    Kp = _round_up(K, 128)
    Hp = _round_up(H, feat_pad)
    Np = _round_up(N, feat_pad)
    budget = int(vmem_cap * 0.75)

    def vmem_need(tm, resident, wh_bufs):
        need = 2 * tm * Kp * BF16                  # x tile, double-buffered
        need += 2 * tm * Np * F32                  # out tile, double-buffered
        need += Kp * Hp * BF16 + Hp * F32          # w_in + b_in (single-buffered)
        need += Hp * Np * BF16 + Np * F32          # w_out + b_out (single-buffered)
        need += tm * Hp * F32                      # resident activation scratch
        if resident:
            need += L * Hp * Hp * BF16 + 3 * L * Hp * F32
        else:
            need += wh_bufs * Hp * Hp * BF16 + 3 * 2 * Hp * F32
        return need

    # Batch tiling: large tiles raise arithmetic intensity vs. streamed weights
    # (roofline knee ~240 / ~670 / ~310 flops/byte on v5e / v6e / v7x).
    desired_tm = 512 if is_v7x else 1024
    B8 = _round_up(B, 8)
    n_tiles = -(-B8 // desired_tm)
    tm = _round_up(-(-B8 // n_tiles), 8)
    # v7x: only the "parallel" batch axis splits across the two TensorCores.
    if is_v7x and n_tiles == 1 and tm >= 16:
        tm = _round_up(-(-tm // 2), 8)
    Bp = _round_up(B8, tm)

    # Weight residency / tile shrink until everything fits the VMEM budget.
    while True:
        if vmem_need(tm, True, 1) <= budget:
            resident_wh, wh_bufs = True, 1
            break
        resident_wh = False
        wh_bufs = 3 if (is_v5e and vmem_need(tm, False, 3) <= budget) else 2
        if vmem_need(tm, False, wh_bufs) <= budget or tm <= 8:
            break
        tm = max(8, _round_up(tm // 2, 8))
        Bp = _round_up(B8, tm)

    need = vmem_need(tm, resident_wh, 1 if resident_wh else wh_bufs)
    vmem_limit = int(min(vmem_cap * 0.78,
                         max(32 * 1024 * 1024, need * 2 + (4 << 20))))
    return dict(Kp=Kp, Hp=Hp, Np=Np, Bp=Bp, tm=tm,
                resident_wh=resident_wh, wh_bufs=wh_bufs, vmem_limit=vmem_limit)


# ------------------------------ fused kernel --------------------------------

def fused_mlp_kernel(x_ref, w_in_ref, b_in_ref, wh_ref, bh_ref, g_ref, bt_ref,
                     w_out_ref, b_out_ref, o_ref, h_ref, *,
                     hidden_size, resident_wh):
    l = pl.program_id(1)
    n_l = pl.num_programs(1)
    li = l if resident_wh else 0   # resident: index stacked weights by layer

    # ---- input layer: first layer-step of each batch tile.
    @pl.when(l == 0)
    def _():
        y0 = jnp.dot(x_ref[...], w_in_ref[...],
                     preferred_element_type=jnp.float32)
        h_ref[...] = jnp.maximum(y0 + b_in_ref[...], 0.0)

    # ---- hidden layer l: Linear -> ReLU -> Dropout(identity) -> LayerNorm.
    h = h_ref[...]
    y = jnp.dot(h.astype(wh_ref.dtype), wh_ref[li],
                preferred_element_type=jnp.float32)
    y = jnp.maximum(y + bh_ref[li], 0.0)
    # TODO(synk): nn.Dropout is stochastic in train mode; identity (eval) here.

    inv_h = 1.0 / hidden_size
    # Padded lanes of y are exactly 0 (zero-padded weight columns / bias), so
    # sum(y) and sum(y*y) over the padded width already equal the sums over the
    # real features -> no lane mask / iota needed.
    mean = jnp.sum(y, axis=-1, keepdims=True) * inv_h
    var = jnp.maximum(jnp.sum(y * y, axis=-1, keepdims=True) * inv_h - mean * mean,
                      0.0)
    y_norm = (y - mean) * lax.rsqrt(var + LN_EPS)
    # Zero-padded gamma/beta re-zero the padded lanes of the activation.
    h_new = y_norm * g_ref[li] + bt_ref[li]
    h_ref[...] = h_new

    # ---- output layer: last layer-step, fed by the in-register LN result.
    @pl.when(l == n_l - 1)
    def _():
        out = jnp.dot(h_new.astype(w_out_ref.dtype), w_out_ref[...],
                      preferred_element_type=jnp.float32)
        o_ref[...] = out + b_out_ref[...]


# ------------------------------ wrapper --------------------------------------

def mlp_forward(params, x):
    w_in, b_in = params["w_in"], params["b_in"]
    w_out, b_out = params["w_out"], params["b_out"]
    hidden = params["hidden"]
    L = len(hidden)
    assert L >= 1, "fused kernel assumes >= 1 hidden (Linear+ReLU+Dropout+LN) block"

    B, K = x.shape
    H = w_in.shape[1]
    N = w_out.shape[1]

    plan = _plan(B, K, H, N, L)
    Kp, Hp, Np = plan["Kp"], plan["Hp"], plan["Np"]
    Bp, tm = plan["Bp"], plan["tm"]
    resident_wh, wh_bufs = plan["resident_wh"], plan["wh_bufs"]
    vmem_limit = plan["vmem_limit"]

    bf16, f32 = jnp.bfloat16, jnp.float32
    xp = _pad_to(x, (Bp, Kp)).astype(bf16)
    w_in_p = _pad_to(w_in, (Kp, Hp)).astype(bf16)
    b_in_p = _pad_to(b_in, (1, Hp)).astype(f32)
    wh = jnp.stack([_pad_to(w, (Hp, Hp)) for (w, _, _, _) in hidden]).astype(bf16)
    bh = jnp.stack([_pad_to(b, (1, Hp)) for (_, b, _, _) in hidden]).astype(f32)
    gm = jnp.stack([_pad_to(g, (1, Hp)) for (_, _, g, _) in hidden]).astype(f32)
    bt = jnp.stack([_pad_to(bb, (1, Hp)) for (_, _, _, bb) in hidden]).astype(f32)
    w_out_p = _pad_to(w_out, (Hp, Np)).astype(bf16)
    b_out_p = _pad_to(b_out, (1, Np)).astype(f32)

    grid = (Bp // tm, L)
    batch_tiles = Bp // tm

    flops = 2 * Bp * (Kp * Hp + L * Hp * Hp + Hp * Np)
    weight_reps = 1 if resident_wh else batch_tiles
    bytes_accessed = (int(xp.nbytes) + Bp * Np * 4
                      + int(w_in_p.nbytes) + int(b_in_p.nbytes)
                      + int(w_out_p.nbytes) + int(b_out_p.nbytes)
                      + weight_reps * (int(wh.nbytes) + int(bh.nbytes)
                                       + int(gm.nbytes) + int(bt.nbytes)))

    kernel = functools.partial(fused_mlp_kernel, hidden_size=H,
                               resident_wh=resident_wh)

    def build(use_buffered):
        def spec(shape, index_map, bufs=None):
            if bufs is None or not use_buffered:
                return pl.BlockSpec(shape, index_map)
            return pl.BlockSpec(shape, index_map, pipeline_mode=pl.Buffered(bufs))

        if resident_wh:
            wh_spec = spec((L, Hp, Hp), lambda m, l: (0, 0, 0), 1)   # fetched once
            vec = lambda: spec((L, 1, Hp), lambda m, l: (0, 0, 0), 1)
        else:
            wh_spec = spec((1, Hp, Hp), lambda m, l: (l, 0, 0),
                           wh_bufs if wh_bufs != 2 else None)        # streamed
            vec = lambda: spec((1, 1, Hp), lambda m, l: (l, 0, 0))

        in_specs = [
            spec((tm, Kp), lambda m, l: (m, 0)),        # x tile (double-buffered)
            spec((Kp, Hp), lambda m, l: (0, 0), 1),     # w_in  resident, 1 buffer
            spec((1, Hp), lambda m, l: (0, 0), 1),      # b_in
            wh_spec,                                    # stacked hidden weights
            vec(),                                      # hidden bias
            vec(),                                      # LN gamma
            vec(),                                      # LN beta
            spec((Hp, Np), lambda m, l: (0, 0), 1),     # w_out resident, 1 buffer
            spec((1, Np), lambda m, l: (0, 0), 1),      # b_out
        ]
        return pl.pallas_call(
            kernel,
            out_shape=jax.ShapeDtypeStruct((Bp, Np), jnp.float32),
            grid_spec=pltpu.PrefetchScalarGridSpec(
                num_scalar_prefetch=0,
                grid=grid,
                in_specs=in_specs,
                out_specs=pl.BlockSpec((tm, Np), lambda m, l: (m, 0)),
                scratch_shapes=[pltpu.VMEM((tm, Hp), jnp.float32)],  # activation
            ),
            compiler_params=pltpu.CompilerParams(
                dimension_semantics=("parallel", "arbitrary"),
                vmem_limit_bytes=int(vmem_limit),
            ),
            cost_estimate=pl.CostEstimate(
                flops=flops, transcendentals=Bp * L,
                bytes_accessed=bytes_accessed),
        )

    args = (xp, w_in_p, b_in_p, wh, bh, gm, bt, w_out_p, b_out_p)
    try:
        out = build(True)(*args)
    except Exception:
        # Safety net: if this Pallas build rejects pipeline_mode on the grid
        # pipeline, fall back to default buffering (correct, just more VMEM).
        out = build(False)(*args)

    return out[:B, :N]


# ------------------------------ params / reference ---------------------------

def init_mlp_params(key, input_size, output_size, hidden_size, num_hidden_layers):
    """Deterministic params. Linear weights stored as [in, out] (pre-transposed)."""
    params = {}
    k = key

    def dense(k, fan_in, fan_out):
        k, kw, kb = jax.random.split(k, 3)
        bound = 1.0 / jnp.sqrt(fan_in)
        w = jax.random.uniform(kw, (fan_in, fan_out), jnp.float32, -bound, bound)
        b = jax.random.uniform(kb, (1, fan_out), jnp.float32, -bound, bound)
        return k, w, b

    k, params["w_in"], params["b_in"] = dense(k, input_size, hidden_size)
    params["hidden"] = []
    for _ in range(num_hidden_layers):
        k, w, b = dense(k, hidden_size, hidden_size)
        gamma = jnp.ones((1, hidden_size), jnp.float32)
        beta = jnp.zeros((1, hidden_size), jnp.float32)
        params["hidden"].append((w, b, gamma, beta))
    k, params["w_out"], params["b_out"] = dense(k, hidden_size, output_size)
    return params


def mlp_reference(params, x):
    """Pure-JAX reference (same bf16 matmul inputs / f32 accumulation)."""
    bf = jnp.bfloat16
    h = jnp.maximum(
        jnp.dot(x.astype(bf), params["w_in"].astype(bf),
                preferred_element_type=jnp.float32) + params["b_in"], 0.0)
    for (w, b, gamma, beta) in params["hidden"]:
        y = jnp.maximum(
            jnp.dot(h.astype(bf), w.astype(bf),
                    preferred_element_type=jnp.float32) + b, 0.0)
        mean = jnp.mean(y, axis=-1, keepdims=True)
        var = jnp.mean((y - mean) ** 2, axis=-1, keepdims=True)
        h = (y - mean) * lax.rsqrt(var + LN_EPS) * gamma + beta
    return jnp.dot(h.astype(bf), params["w_out"].astype(bf),
                   preferred_element_type=jnp.float32) + params["b_out"]


if __name__ == "__main__":
    input_size, output_size, hidden_size, num_hidden_layers = 16, 8, 32, 2
    batch = 8

    key = jax.random.PRNGKey(0)
    kx, kp = jax.random.split(key)
    x = jax.random.normal(kx, (batch, input_size), jnp.float32)
    params = init_mlp_params(kp, input_size, output_size, hidden_size,
                             num_hidden_layers)

    out = jax.block_until_ready(mlp_forward(params, x))
    ref = mlp_reference(params, x)
    assert out.shape == (batch, output_size)
    assert jnp.allclose(out, ref, atol=1e-3, rtol=1e-3), \
        f"max abs err {jnp.max(jnp.abs(out - ref))}"
    print("KERNEL_OK")
</pallas_src>

<mosaic_0001>
module attributes {stable_mosaic.version = 11 : i64} {
  func.func @fused_mlp_kernel(%arg0: i32, %arg1: i32, %arg2: memref<8x128xbf16, #tpu.memory_space<vmem>>, %arg3: memref<128x128xbf16, #tpu.memory_space<vmem>>, %arg4: memref<1x128xf32, #tpu.memory_space<vmem>>, %arg5: memref<2x128x128xbf16, #tpu.memory_space<vmem>>, %arg6: memref<2x1x128xf32, #tpu.memory_space<vmem>>, %arg7: memref<2x1x128xf32, #tpu.memory_space<vmem>>, %arg8: memref<2x1x128xf32, #tpu.memory_space<vmem>>, %arg9: memref<128x128xbf16, #tpu.memory_space<vmem>>, %arg10: memref<1x128xf32, #tpu.memory_space<vmem>>, %arg11: memref<8x128xf32, #tpu.memory_space<vmem>>, %arg12: memref<8x128xf32, #tpu.memory_space<vmem>>) attributes {dimension_semantics = [#tpu.dimension_semantics<parallel>, #tpu.dimension_semantics<arbitrary>], iteration_bounds = array<i64: 1, 2>, scalar_prefetch = 0 : i64, scratch_operands = 1 : i64, tpu.core_type = #tpu.core_type<tc>, window_params = [{transform_indices = @transform_0, window_bounds = array<i64: 8, 128>}, {pipeline_mode = #tpu.pipeline_mode<synchronous>, transform_indices = @transform_1, window_bounds = array<i64: 128, 128>}, {pipeline_mode = #tpu.pipeline_mode<synchronous>, transform_indices = @transform_2, window_bounds = array<i64: 1, 128>}, {pipeline_mode = #tpu.pipeline_mode<synchronous>, transform_indices = @transform_3, window_bounds = array<i64: 2, 128, 128>}, {pipeline_mode = #tpu.pipeline_mode<synchronous>, transform_indices = @transform_4, window_bounds = array<i64: 2, 1, 128>}, {pipeline_mode = #tpu.pipeline_mode<synchronous>, transform_indices = @transform_5, window_bounds = array<i64: 2, 1, 128>}, {pipeline_mode = #tpu.pipeline_mode<synchronous>, transform_indices = @transform_6, window_bounds = array<i64: 2, 1, 128>}, {pipeline_mode = #tpu.pipeline_mode<synchronous>, transform_indices = @transform_7, window_bounds = array<i64: 128, 128>}, {pipeline_mode = #tpu.pipeline_mode<synchronous>, transform_indices = @transform_8, window_bounds = array<i64: 1, 128>}, {transform_indices = @transform_9, window_bounds = array<i64: 8, 128>}]} {
    %c0_i32 = arith.constant 0 : i32
    %0 = arith.cmpi eq, %arg1, %c0_i32 : i32
    %1 = arith.extui %0 : i1 to i32
    %c0_i32_0 = arith.constant 0 : i32
    %2 = arith.cmpi ne, %1, %c0_i32_0 : i32
    scf.if %2 {
      %c0_20 = arith.constant 0 : index
      %c0_21 = arith.constant 0 : index
      %50 = vector.load %arg2[%c0_20, %c0_21] : memref<8x128xbf16, #tpu.memory_space<vmem>>, vector<8x128xbf16>
      %c0_22 = arith.constant 0 : index
      %c0_23 = arith.constant 0 : index
      %51 = vector.load %arg3[%c0_22, %c0_23] : memref<128x128xbf16, #tpu.memory_space<vmem>>, vector<128x128xbf16>
      %cst_24 = arith.constant dense<0.000000e+00> : vector<8x128xf32>
      %52 = tpu.matmul %50, %51, %cst_24 {dimension_numbers = #tpu.dot_dimension_numbers<[1], [0], [0], [1], [0, 0, 1, 1], [], []>} : vector<8x128xbf16>, vector<128x128xbf16>, vector<8x128xf32> -> vector<8x128xf32>
      %c0_25 = arith.constant 0 : index
      %c0_26 = arith.constant 0 : index
      %53 = vector.load %arg4[%c0_25, %c0_26] : memref<1x128xf32, #tpu.memory_space<vmem>>, vector<1x128xf32>
      %54 = vector.broadcast %53 : vector<1x128xf32> to vector<8x128xf32>
      %55 = arith.addf %52, %54 : vector<8x128xf32>
      %cst_27 = arith.constant 0.000000e+00 : f32
      %56 = vector.broadcast %cst_27 : f32 to vector<8x128xf32>
      %57 = arith.maximumf %55, %56 : vector<8x128xf32>
      %c0_28 = arith.constant 0 : index
      %c0_29 = arith.constant 0 : index
      %58 = vector.load %arg12[%c0_28, %c0_29] : memref<8x128xf32, #tpu.memory_space<vmem>>, vector<8x128xf32>
      tpu.vector_store %arg12[%c0_28, %c0_29], %57 {strides = array<i32>} : memref<8x128xf32, #tpu.memory_space<vmem>>, vector<8x128xf32>,
    } else {
    }
    %c0 = arith.constant 0 : index
    %c0_1 = arith.constant 0 : index
    %3 = vector.load %arg12[%c0, %c0_1] : memref<8x128xf32, #tpu.memory_space<vmem>>, vector<8x128xf32>
    %4 = arith.truncf %3 : vector<8x128xf32> to vector<8x128xbf16>
    %5 = arith.index_cast %arg1 : i32 to index
    %c0_2 = arith.constant 0 : index
    %c0_3 = arith.constant 0 : index
    %6 = vector.load %arg5[%5, %c0_2, %c0_3] : memref<2x128x128xbf16, #tpu.memory_space<vmem>>, vector<1x128x128xbf16>
    %7 = vector.shape_cast %6 : vector<1x128x128xbf16> to vector<128x128xbf16>
    %cst = arith.constant dense<0.000000e+00> : vector<8x128xf32>
    %8 = tpu.matmul %4, %7, %cst {dimension_numbers = #tpu.dot_dimension_numbers<[1], [0], [0], [1], [0, 0, 1, 1], [], []>} : vector<8x128xbf16>, vector<128x128xbf16>, vector<8x128xf32> -> vector<8x128xf32>
    %9 = arith.index_cast %arg1 : i32 to index
    %c0_4 = arith.constant 0 : index
    %c0_5 = arith.constant 0 : index
    %10 = vector.load %arg6[%9, %c0_4, %c0_5] : memref<2x1x128xf32, #tpu.memory_space<vmem>>, vector<1x1x128xf32>
    %11 = vector.shape_cast %10 : vector<1x1x128xf32> to vector<1x128xf32>
    %12 = vector.broadcast %11 : vector<1x128xf32> to vector<8x128xf32>
    %13 = arith.addf %8, %12 : vector<8x128xf32>
    %cst_6 = arith.constant 0.000000e+00 : f32
    %14 = vector.broadcast %cst_6 : f32 to vector<8x128xf32>
    %15 = arith.maximumf %13, %14 : vector<8x128xf32>
    %cst_7 = arith.constant dense<0.000000e+00> : vector<8xf32>
    %16 = vector.multi_reduction <add>, %15, %cst_7 [1] : vector<8x128xf32> to vector<8xf32>
    %17 = vector.shape_cast %16 : vector<8xf32> to vector<8x1xf32>
    %cst_8 = arith.constant 3.125000e-02 : f32
    %18 = vector.broadcast %cst_8 : f32 to vector<8x1xf32>
    %19 = arith.mulf %17, %18 : vector<8x1xf32>
    %20 = arith.mulf %15, %15 : vector<8x128xf32>
    %cst_9 = arith.constant dense<0.000000e+00> : vector<8xf32>
    %21 = vector.multi_reduction <add>, %20, %cst_9 [1] : vector<8x128xf32> to vector<8xf32>
    %22 = vector.shape_cast %21 : vector<8xf32> to vector<8x1xf32>
    %cst_10 = arith.constant 3.125000e-02 : f32
    %23 = vector.broadcast %cst_10 : f32 to vector<8x1xf32>
    %24 = arith.mulf %22, %23 : vector<8x1xf32>
    %25 = arith.mulf %19, %19 : vector<8x1xf32>
    %26 = arith.subf %24, %25 : vector<8x1xf32>
    %cst_11 = arith.constant 0.000000e+00 : f32
    %27 = vector.broadcast %cst_11 : f32 to vector<8x1xf32>
    %28 = arith.maximumf %26, %27 : vector<8x1xf32>
    %29 = vector.broadcast %19 : vector<8x1xf32> to vector<8x128xf32>
    %30 = arith.subf %15, %29 : vector<8x128xf32>
    %cst_12 = arith.constant 9.99999974E-6 : f32
    %31 = vector.broadcast %cst_12 : f32 to vector<8x1xf32>
    %32 = arith.addf %28, %31 : vector<8x1xf32>
    %33 = math.rsqrt %32 : vector<8x1xf32>
    %34 = vector.broadcast %33 : vector<8x1xf32> to vector<8x128xf32>
    %35 = arith.mulf %30, %34 : vector<8x128xf32>
    %36 = arith.index_cast %arg1 : i32 to index
    %c0_13 = arith.constant 0 : index
    %c0_14 = arith.constant 0 : index
    %37 = vector.load %arg7[%36, %c0_13, %c0_14] : memref<2x1x128xf32, #tpu.memory_space<vmem>>, vector<1x1x128xf32>
    %38 = vector.shape_cast %37 : vector<1x1x128xf32> to vector<1x128xf32>
    %39 = vector.broadcast %38 : vector<1x128xf32> to vector<8x128xf32>
    %40 = arith.mulf %35, %39 : vector<8x128xf32>
    %41 = arith.index_cast %arg1 : i32 to index
    %c0_15 = arith.constant 0 : index
    %c0_16 = arith.constant 0 : index
    %42 = vector.load %arg8[%41, %c0_15, %c0_16] : memref<2x1x128xf32, #tpu.memory_space<vmem>>, vector<1x1x128xf32>
    %43 = vector.shape_cast %42 : vector<1x1x128xf32> to vector<1x128xf32>
    %44 = vector.broadcast %43 : vector<1x128xf32> to vector<8x128xf32>
    %45 = arith.addf %40, %44 : vector<8x128xf32>
    %c0_17 = arith.constant 0 : index
    %c0_18 = arith.constant 0 : index
    %46 = vector.load %arg12[%c0_17, %c0_18] : memref<8x128xf32, #tpu.memory_space<vmem>>, vector<8x128xf32>
    tpu.vector_store %arg12[%c0_17, %c0_18], %45 {strides = array<i32>} : memref<8x128xf32, #tpu.memory_space<vmem>>, vector<8x128xf32>,
    %c1_i32 = arith.constant 1 : i32
    %47 = arith.cmpi eq, %arg1, %c1_i32 : i32
    %48 = arith.extui %47 : i1 to i32
    %c0_i32_19 = arith.constant 0 : i32
    %49 = arith.cmpi ne, %48, %c0_i32_19 : i32
    scf.if %49 {
      %50 = arith.truncf %45 : vector<8x128xf32> to vector<8x128xbf16>
      %c0_20 = arith.constant 0 : index
      %c0_21 = arith.constant 0 : index
      %51 = vector.load %arg9[%c0_20, %c0_21] : memref<128x128xbf16, #tpu.memory_space<vmem>>, vector<128x128xbf16>
      %cst_22 = arith.constant dense<0.000000e+00> : vector<8x128xf32>
      %52 = tpu.matmul %50, %51, %cst_22 {dimension_numbers = #tpu.dot_dimension_numbers<[1], [0], [0], [1], [0, 0, 1, 1], [], []>} : vector<8x128xbf16>, vector<128x128xbf16>, vector<8x128xf32> -> vector<8x128xf32>
      %c0_23 = arith.constant 0 : index
      %c0_24 = arith.constant 0 : index
      %53 = vector.load %arg10[%c0_23, %c0_24] : memref<1x128xf32, #tpu.memory_space<vmem>>, vector<1x128xf32>
      %54 = vector.broadcast %53 : vector<1x128xf32> to vector<8x128xf32>
      %55 = arith.addf %52, %54 : vector<8x128xf32>
      %c0_25 = arith.constant 0 : index
      %c0_26 = arith.constant 0 : index
      %56 = vector.load %arg11[%c0_25, %c0_26] : memref<8x128xf32, #tpu.memory_space<vmem>>, vector<8x128xf32>
      tpu.vector_store %arg11[%c0_25, %c0_26], %55 {strides = array<i32>} : memref<8x128xf32, #tpu.memory_space<vmem>>, vector<8x128xf32>,
    } else {
    }
    return
  }
  func.func @transform_0(%arg0: i32, %arg1: i32) -> (i32, i32) {
    %c0_i32 = arith.constant 0 : i32
    %c0_i32_0 = arith.constant 0 : i32
    return %arg0, %c0_i32 : i32, i32
  }
  func.func @transform_1(%arg0: i32, %arg1: i32) -> (i32, i32) {
    %c0_i32 = arith.constant 0 : i32
    %c0_i32_0 = arith.constant 0 : i32
    %c0_i32_1 = arith.constant 0 : i32
    return %c0_i32, %c0_i32_0 : i32, i32
  }
  func.func @transform_2(%arg0: i32, %arg1: i32) -> (i32, i32) {
    %c0_i32 = arith.constant 0 : i32
    %c0_i32_0 = arith.constant 0 : i32
    %c0_i32_1 = arith.constant 0 : i32
    return %c0_i32, %c0_i32_0 : i32, i32
  }
  func.func @transform_3(%arg0: i32, %arg1: i32) -> (i32, i32, i32) {
    %c0_i32 = arith.constant 0 : i32
    %c0_i32_0 = arith.constant 0 : i32
    %c0_i32_1 = arith.constant 0 : i32
    %c0_i32_2 = arith.constant 0 : i32
    return %c0_i32, %c0_i32_0, %c0_i32_1 : i32, i32, i32
  }
  func.func @transform_4(%arg0: i32, %arg1: i32) -> (i32, i32, i32) {
    %c0_i32 = arith.constant 0 : i32
    %c0_i32_0 = arith.constant 0 : i32
    %c0_i32_1 = arith.constant 0 : i32
    %c0_i32_2 = arith.constant 0 : i32
    return %c0_i32, %c0_i32_0, %c0_i32_1 : i32, i32, i32
  }
  func.func @transform_5(%arg0: i32, %arg1: i32) -> (i32, i32, i32) {
    %c0_i32 = arith.constant 0 : i32
    %c0_i32_0 = arith.constant 0 : i32
    %c0_i32_1 = arith.constant 0 : i32
    %c0_i32_2 = arith.constant 0 : i32
    return %c0_i32, %c0_i32_0, %c0_i32_1 : i32, i32, i32
  }
  func.func @transform_6(%arg0: i32, %arg1: i32) -> (i32, i32, i32) {
    %c0_i32 = arith.constant 0 : i32
    %c0_i32_0 = arith.constant 0 : i32
    %c0_i32_1 = arith.constant 0 : i32
    %c0_i32_2 = arith.constant 0 : i32
    return %c0_i32, %c0_i32_0, %c0_i32_1 : i32, i32, i32
  }
  func.func @transform_7(%arg0: i32, %arg1: i32) -> (i32, i32) {
    %c0_i32 = arith.constant 0 : i32
    %c0_i32_0 = arith.constant 0 : i32
    %c0_i32_1 = arith.constant 0 : i32
    return %c0_i32, %c0_i32_0 : i32, i32
  }
  func.func @transform_8(%arg0: i32, %arg1: i32) -> (i32, i32) {
    %c0_i32 = arith.constant 0 : i32
    %c0_i32_0 = arith.constant 0 : i32
    %c0_i32_1 = arith.constant 0 : i32
    return %c0_i32, %c0_i32_0 : i32, i32
  }
  func.func @transform_9(%arg0: i32, %arg1: i32) -> (i32, i32) {
    %c0_i32 = arith.constant 0 : i32
    %c0_i32_0 = arith.constant 0 : i32
    return %arg0, %c0_i32 : i32, i32
  }
}

module attributes {stable_mosaic.version = 11 : i64} {
  func.func @fused_mlp_kernel(%arg0: i32, %arg1: i32, %arg2: memref<8x128xbf16, #tpu.memory_space<vmem>>, %arg3: memref<128x128xbf16, #tpu.memory_space<vmem>>, %arg4: memref<1x128xf32, #tpu.memory_space<vmem>>, %arg5: memref<2x128x128xbf16, #tpu.memory_space<vmem>>, %arg6: memref<2x1x128xf32, #tpu.memory_space<vmem>>, %arg7: memref<2x1x128xf32, #tpu.memory_space<vmem>>, %arg8: memref<2x1x128xf32, #tpu.memory_space<vmem>>, %arg9: memref<128x128xbf16, #tpu.memory_space<vmem>>, %arg10: memref<1x128xf32, #tpu.memory_space<vmem>>, %arg11: memref<8x128xf32, #tpu.memory_space<vmem>>, %arg12: memref<8x128xf32, #tpu.memory_space<vmem>>) attributes {dimension_semantics = [#tpu.dimension_semantics<parallel>, #tpu.dimension_semantics<arbitrary>], iteration_bounds = array<i64: 1, 2>, scalar_prefetch = 0 : i64, scratch_operands = 1 : i64, tpu.core_type = #tpu.core_type<tc>, window_params = [{transform_indices = @transform_0, window_bounds = array<i64: 8, 128>}, {pipeline_mode = #tpu.pipeline_mode<synchronous>, transform_indices = @transform_1, window_bounds = array<i64: 128, 128>}, {pipeline_mode = #tpu.pipeline_mode<synchronous>, transform_indices = @transform_2, window_bounds = array<i64: 1, 128>}, {pipeline_mode = #tpu.pipeline_mode<synchronous>, transform_indices = @transform_3, window_bounds = array<i64: 2, 128, 128>}, {pipeline_mode = #tpu.pipeline_mode<synchronous>, transform_indices = @transform_4, window_bounds = array<i64: 2, 1, 128>}, {pipeline_mode = #tpu.pipeline_mode<synchronous>, transform_indices = @transform_5, window_bounds = array<i64: 2, 1, 128>}, {pipeline_mode = #tpu.pipeline_mode<synchronous>, transform_indices = @transform_6, window_bounds = array<i64: 2, 1, 128>}, {pipeline_mode = #tpu.pipeline_mode<synchronous>, transform_indices = @transform_7, window_bounds = array<i64: 128, 128>}, {pipeline_mode = #tpu.pipeline_mode<synchronous>, transform_indices = @transform_8, window_bounds = array<i64: 1, 128>}, {transform_indices = @transform_9, window_bounds = array<i64: 8, 128>}]} {
    %c0_i32 = arith.constant 0 : i32
    %0 = arith.cmpi eq, %arg1, %c0_i32 : i32
    %1 = arith.extui %0 : i1 to i32
    %c0_i32_0 = arith.constant 0 : i32
    %2 = arith.cmpi ne, %1, %c0_i32_0 : i32
    scf.if %2 {
      %c0_20 = arith.constant 0 : index
      %c0_21 = arith.constant 0 : index
      %50 = vector.load %arg2[%c0_20, %c0_21] : memref<8x128xbf16, #tpu.memory_space<vmem>>, vector<8x128xbf16>
      %c0_22 = arith.constant 0 : index
      %c0_23 = arith.constant 0 : index
      %51 = vector.load %arg3[%c0_22, %c0_23] : memref<128x128xbf16, #tpu.memory_space<vmem>>, vector<128x128xbf16>
      %cst_24 = arith.constant dense<0.000000e+00> : vector<8x128xf32>
      %52 = tpu.matmul %50, %51, %cst_24 {dimension_numbers = #tpu.dot_dimension_numbers<[1], [0], [0], [1], [0, 0, 1, 1], [], []>} : vector<8x128xbf16>, vector<128x128xbf16>, vector<8x128xf32> -> vector<8x128xf32>
      %c0_25 = arith.constant 0 : index
      %c0_26 = arith.constant 0 : index
      %53 = vector.load %arg4[%c0_25, %c0_26] : memref<1x128xf32, #tpu.memory_space<vmem>>, vector<1x128xf32>
      %54 = vector.broadcast %53 : vector<1x128xf32> to vector<8x128xf32>
      %55 = arith.addf %52, %54 : vector<8x128xf32>
      %cst_27 = arith.constant 0.000000e+00 : f32
      %56 = vector.broadcast %cst_27 : f32 to vector<8x128xf32>
      %57 = arith.maximumf %55, %56 : vector<8x128xf32>
      %c0_28 = arith.constant 0 : index
      %c0_29 = arith.constant 0 : index
      %58 = vector.load %arg12[%c0_28, %c0_29] : memref<8x128xf32, #tpu.memory_space<vmem>>, vector<8x128xf32>
      tpu.vector_store %arg12[%c0_28, %c0_29], %57 {strides = array<i32>} : memref<8x128xf32, #tpu.memory_space<vmem>>, vector<8x128xf32>,
    } else {
    }
    %c0 = arith.constant 0 : index
    %c0_1 = arith.constant 0 : index
    %3 = vector.load %arg12[%c0, %c0_1] : memref<8x128xf32, #tpu.memory_space<vmem>>, vector<8x128xf32>
    %4 = arith.truncf %3 : vector<8x128xf32> to vector<8x128xbf16>
    %5 = arith.index_cast %arg1 : i32 to index
    %c0_2 = arith.constant 0 : index
    %c0_3 = arith.constant 0 : index
    %6 = vector.load %arg5[%5, %c0_2, %c0_3] : memref<2x128x128xbf16, #tpu.memory_space<vmem>>, vector<1x128x128xbf16>
    %7 = vector.shape_cast %6 : vector<1x128x128xbf16> to vector<128x128xbf16>
    %cst = arith.constant dense<0.000000e+00> : vector<8x128xf32>
    %8 = tpu.matmul %4, %7, %cst {dimension_numbers = #tpu.dot_dimension_numbers<[1], [0], [0], [1], [0, 0, 1, 1], [], []>} : vector<8x128xbf16>, vector<128x128xbf16>, vector<8x128xf32> -> vector<8x128xf32>
    %9 = arith.index_cast %arg1 : i32 to index
    %c0_4 = arith.constant 0 : index
    %c0_5 = arith.constant 0 : index
    %10 = vector.load %arg6[%9, %c0_4, %c0_5] : memref<2x1x128xf32, #tpu.memory_space<vmem>>, vector<1x1x128xf32>
    %11 = vector.shape_cast %10 : vector<1x1x128xf32> to vector<1x128xf32>
    %12 = vector.broadcast %11 : vector<1x128xf32> to vector<8x128xf32>
    %13 = arith.addf %8, %12 : vector<8x128xf32>
    %cst_6 = arith.constant 0.000000e+00 : f32
    %14 = vector.broadcast %cst_6 : f32 to vector<8x128xf32>
    %15 = arith.maximumf %13, %14 : vector<8x128xf32>
    %cst_7 = arith.constant dense<0.000000e+00> : vector<8xf32>
    %16 = vector.multi_reduction <add>, %15, %cst_7 [1] : vector<8x128xf32> to vector<8xf32>
    %17 = vector.shape_cast %16 : vector<8xf32> to vector<8x1xf32>
    %cst_8 = arith.constant 3.125000e-02 : f32
    %18 = vector.broadcast %cst_8 : f32 to vector<8x1xf32>
    %19 = arith.mulf %17, %18 : vector<8x1xf32>
    %20 = arith.mulf %15, %15 : vector<8x128xf32>
    %cst_9 = arith.constant dense<0.000000e+00> : vector<8xf32>
    %21 = vector.multi_reduction <add>, %20, %cst_9 [1] : vector<8x128xf32> to vector<8xf32>
    %22 = vector.shape_cast %21 : vector<8xf32> to vector<8x1xf32>
    %cst_10 = arith.constant 3.125000e-02 : f32
    %23 = vector.broadcast %cst_10 : f32 to vector<8x1xf32>
    %24 = arith.mulf %22, %23 : vector<8x1xf32>
    %25 = arith.mulf %19, %19 : vector<8x1xf32>
    %26 = arith.subf %24, %25 : vector<8x1xf32>
    %cst_11 = arith.constant 0.000000e+00 : f32
    %27 = vector.broadcast %cst_11 : f32 to vector<8x1xf32>
    %28 = arith.maximumf %26, %27 : vector<8x1xf32>
    %29 = vector.broadcast %19 : vector<8x1xf32> to vector<8x128xf32>
    %30 = arith.subf %15, %29 : vector<8x128xf32>
    %cst_12 = arith.constant 9.99999974E-6 : f32
    %31 = vector.broadcast %cst_12 : f32 to vector<8x1xf32>
    %32 = arith.addf %28, %31 : vector<8x1xf32>
    %33 = math.rsqrt %32 : vector<8x1xf32>
    %34 = vector.broadcast %33 : vector<8x1xf32> to vector<8x128xf32>
    %35 = arith.mulf %30, %34 : vector<8x128xf32>
    %36 = arith.index_cast %arg1 : i32 to index
    %c0_13 = arith.constant 0 : index
    %c0_14 = arith.constant 0 : index
    %37 = vector.load %arg7[%36, %c0_13, %c0_14] : memref<2x1x128xf32, #tpu.memory_space<vmem>>, vector<1x1x128xf32>
    %38 = vector.shape_cast %37 : vector<1x1x128xf32> to vector<1x128xf32>
    %39 = vector.broadcast %38 : vector<1x128xf32> to vector<8x128xf32>
    %40 = arith.mulf %35, %39 : vector<8x128xf32>
    %41 = arith.index_cast %arg1 : i32 to index
    %c0_15 = arith.constant 0 : index
    %c0_16 = arith.constant 0 : index
    %42 = vector.load %arg8[%41, %c0_15, %c0_16] : memref<2x1x128xf32, #tpu.memory_space<vmem>>, vector<1x1x128xf32>
    %43 = vector.shape_cast %42 : vector<1x1x128xf32> to vector<1x128xf32>
    %44 = vector.broadcast %43 : vector<1x128xf32> to vector<8x128xf32>
    %45 = arith.addf %40, %44 : vector<8x128xf32>
    %c0_17 = arith.constant 0 : index
    %c0_18 = arith.constant 0 : index
    %46 = vector.load %arg12[%c0_17, %c0_18] : memref<8x128xf32, #tpu.memory_space<vmem>>, vector<8x128xf32>
    tpu.vector_store %arg12[%c0_17, %c0_18], %45 {strides = array<i32>} : memref<8x128xf32, #tpu.memory_space<vmem>>, vector<8x128xf32>,
    %c1_i32 = arith.constant 1 : i32
    %47 = arith.cmpi eq, %arg1, %c1_i32 : i32
    %48 = arith.extui %47 : i1 to i32
    %c0_i32_19 = arith.constant 0 : i32
    %49 = arith.cmpi ne, %48, %c0_i32_19 : i32
    scf.if %49 {
      %50 = arith.truncf %45 : vector<8x128xf32> to vector<8x128xbf16>
      %c0_20 = arith.constant 0 : index
      %c0_21 = arith.constant 0 : index
      %51 = vector.load %arg9[%c0_20, %c0_21] : memref<128x128xbf16, #tpu.memory_space<vmem>>, vector<128x128xbf16>
      %cst_22 = arith.constant dense<0.000000e+00> : vector<8x128xf32>
      %52 = tpu.matmul %50, %51, %cst_22 {dimension_numbers = #tpu.dot_dimension_numbers<[1], [0], [0], [1], [0, 0, 1, 1], [], []>} : vector<8x128xbf16>, vector<128x128xbf16>, vector<8x128xf32> -> vector<8x128xf32>
      %c0_23 = arith.constant 0 : index
      %c0_24 = arith.constant 0 : index
      %53 = vector.load %arg10[%c0_23, %c0_24] : memref<1x128xf32, #tpu.memory_space<vmem>>, vector<1x128xf32>
      %54 = vector.broadcast %53 : vector<1x128xf32> to vector<8x128xf32>
      %55 = arith.addf %52, %54 : vector<8x128xf32>
      %c0_25 = arith.constant 0 : index
      %c0_26 = arith.constant 0 : index
      %56 = vector.load %arg11[%c0_25, %c0_26] : memref<8x128xf32, #tpu.memory_space<vmem>>, vector<8x128xf32>
      tpu.vector_store %arg11[%c0_25, %c0_26], %55 {strides = array<i32>} : memref<8x128xf32, #tpu.memory_space<vmem>>, vector<8x128xf32>,
    } else {
    }
    return
  }
  func.func @transform_0(%arg0: i32, %arg1: i32) -> (i32, i32) {
    %c0_i32 = arith.constant 0 : i32
    %c0_i32_0 = arith.constant 0 : i32
    return %arg0, %c0_i32 : i32, i32
  }
  func.func @transform_1(%arg0: i32, %arg1: i32) -> (i32, i32) {
    %c0_i32 = arith.constant 0 : i32
    %c0_i32_0 = arith.constant 0 : i32
    %c0_i32_1 = arith.constant 0 : i32
    return %c0_i32, %c0_i32_0 : i32, i32
  }
  func.func @transform_2(%arg0: i32, %arg1: i32) -> (i32, i32) {
    %c0_i32 = arith.constant 0 : i32
    %c0_i32_0 = arith.constant 0 : i32
    %c0_i32_1 = arith.constant 0 : i32
    return %c0_i32, %c0_i32_0 : i32, i32
  }
  func.func @transform_3(%arg0: i32, %arg1: i32) -> (i32, i32, i32) {
    %c0_i32 = arith.constant 0 : i32
    %c0_i32_0 = arith.constant 0 : i32
    %c0_i32_1 = arith.constant 0 : i32
    %c0_i32_2 = arith.constant 0 : i32
    return %c0_i32, %c0_i32_0, %c0_i32_1 : i32, i32, i32
  }
  func.func @transform_4(%arg0: i32, %arg1: i32) -> (i32, i32, i32) {
    %c0_i32 = arith.constant 0 : i32
    %c0_i32_0 = arith.constant 0 : i32
    %c0_i32_1 = arith.constant 0 : i32
    %c0_i32_2 = arith.constant 0 : i32
    return %c0_i32, %c0_i32_0, %c0_i32_1 : i32, i32, i32
  }
  func.func @transform_5(%arg0: i32, %arg1: i32) -> (i32, i32, i32) {
    %c0_i32 = arith.constant 0 : i32
    %c0_i32_0 = arith.constant 0 : i32
    %c0_i32_1 = arith.constant 0 : i32
    %c0_i32_2 = arith.constant 0 : i32
    return %c0_i32, %c0_i32_0, %c0_i32_1 : i32, i32, i32
  }
  func.func @transform_6(%arg0: i32, %arg1: i32) -> (i32, i32, i32) {
    %c0_i32 = arith.constant 0 : i32
    %c0_i32_0 = arith.constant 0 : i32
    %c0_i32_1 = arith.constant 0 : i32
    %c0_i32_2 = arith.constant 0 : i32
    return %c0_i32, %c0_i32_0, %c0_i32_1 : i32, i32, i32
  }
  func.func @transform_7(%arg0: i32, %arg1: i32) -> (i32, i32) {
    %c0_i32 = arith.constant 0 : i32
    %c0_i32_0 = arith.constant 0 : i32
    %c0_i32_1 = arith.constant 0 : i32
    return %c0_i32, %c0_i32_0 : i32, i32
  }
  func.func @transform_8(%arg0: i32, %arg1: i32) -> (i32, i32) {
    %c0_i32 = arith.constant 0 : i32
    %c0_i32_0 = arith.constant 0 : i32
    %c0_i32_1 = arith.constant 0 : i32
    return %c0_i32, %c0_i32_0 : i32, i32
  }
  func.func @transform_9(%arg0: i32, %arg1: i32) -> (i32, i32) {
    %c0_i32 = arith.constant 0 : i32
    %c0_i32_0 = arith.constant 0 : i32
    return %arg0, %c0_i32 : i32, i32
  }
}

</mosaic_0001>

<bundles_post_ra>
// kernel: tpu_custom_call.1
= control target key start
LH: loop header
LB: loop body
LE: loop exit
PB: predicated region body
PF: predicated region fallthrough
CT: control target
= control target key end

     0   :  { %14 = vsyncpa [#allocation4], 0  ;;  %s1556_s0 = inlined_call_operand.hbm [shape: bf16[8,128], index: 0, kind: input, shape index: {}]   ;;  %s1557_s1 = inlined_call_operand.hbm [shape: bf16[128,128], index: 1, kind: input, shape index: {}]   ;;  %s1558_s2 = inlined_call_operand.vmem [shape: f32[1,128], index: 2, kind: input, shape index: {}]   ;;  %s1559_s3 = inlined_call_operand.hbm [shape: bf16[2,128,128], index: 3, kind: input, shape index: {}]   ;;  %s1560_s4 = inlined_call_operand.vmem [shape: f32[2,1,128], index: 4, kind: input, shape index: {}]   ;;  %s1561_s5 = inlined_call_operand.vmem [shape: f32[2,1,128], index: 5, kind: input, shape index: {}]   ;;  %s1562_s6 = inlined_call_operand.vmem [shape: f32[2,1,128], index: 6, kind: input, shape index: {}]   ;;  %s1563_s7 = inlined_call_operand.hbm [shape: bf16[128,128], index: 7, kind: input, shape index: {}]   ;;  %s1564_s8 = inlined_call_operand.vmem [shape: f32[1,128], index: 8, kind: input, shape index: {}]   ;;  %s1565_s9 = inlined_call_operand.hbm [shape: f32[8,128], index: 9, kind: output, shape index: {}]  }
   0x1   :  { %15 = vsyncpa [#allocation7], 0 }
   0x2   :  { %16 = vsyncpa [#allocation10], 0 }
   0x3   :  { %17 = vsyncpa [#allocation5], 0  ;;  %s1345_s30 = smov 0   ;;  %s1347_s10 = smov 0  }
   0x4   :  { %s1349_s11 = smov 0  }
   0x5 LB: > { %1573 = sst [smem:[#allocation16_spill]] %s1276_s10  ;;  %s1282_s12 = smov [#allocation6]   ;;  %s1280_s11 = sphi %s1349_s11, %s23_s11   ;;  %s1276_s10 = sphi %s1347_s10, %s1585_s10   ;;  %s1272_s30 = sphi %s1345_s30, %s1584_s30  }
   0x6   : > { %s285_s13 = sshll.u32 %s1282_s12, 4  ;;  %s1568_s14 = sadd.s32 4294967295, %s1280_s11   ;;  %s1369_s13 = int_to_ptr.vmem [resolvable:$true] %s285_s13 }
   0x7   : > { %p863_p0 = scmp.ge.s32.totalorder %s1280_s11, 1  ;;  %p260_p1 = scmp.lt.s32.totalorder %s1280_s11, 3 }
   0x8   : > { %p1365_p2 = scmp.eq.s32.totalorder %s1568_s14, 0  ;;  %s32_s18 = sadd.s32 1, %s1276_s10 }
   0x9   : > { %p1371_p3 = pnand %p863_p0, %p260_p1  ;;  %p1384_p6 = scmp.ge.s32.totalorder %s32_s18, 2 }
   0xa   : > { %s1574_s15 = scalar_select %p1365_p2, 1, 0 }
   0xb   : > { %s1575_s16 = scalar_select %p1371_p3, 1, 0 }
   0xc   : > { %p1018_p4 = pneg %p1371_p3  ;;  %s1283_s20 = smov [#allocation3]  }
   0xd   : > { %s275_s21 = sshll.u32 %s1283_s20, 4  ;;  %s1104_s24 = scalar_lea.hbm %s1557_s1, 1024  ;;  %s276_s21 = int_to_ptr.vmem [resolvable:$true] %s275_s21 }
   0xe   : > { %p1379_p5 = pnand %p1365_p2, %p1018_p4  ;;  %p1105_p7 = scmp.ne.s32.totalorder %s1557_s1, %s1104_s24 }
   0xf   : > { %p1111_p11 = scmp.lt.u32.totalorder %s1104_s24, %s1557_s1 }
  0x10   : > { %p1396_p8 = pneg %p1379_p5 }
  0x12   : > { %p1107_p9 = pnand %p1396_p8, %p1105_p7 }
  0x14   : > { %p1108_p10 = pneg %p1107_p9 }
  0x16   : > { %p1113_p12 = pnand %p1111_p11, %p1108_p10 }
  0x18   : > { %1116 = shalt.err (!%p1113_p12)
}
  0x19   : > { %s1117_s12 = scalar_lea.vmem %s1369_s13, 1024  ;;  %p1125_p4 = scmp.lt.s32.totalorder %s1369_s13, %s1369_s13 }
  0x1a   : > { %p1118_p13 = scmp.ne.s32.totalorder %s1369_s13, %s1117_s12  ;;  %p1126_p2 = scmp.lt.s32.totalorder %s1117_s12, %s1117_s12 }
  0x1c   : > { %p1120_p0 = pnand %p1118_p13, %p1396_p8  ;;  %p1127_p7 = por %p1126_p2, %p1125_p4 }
  0x1e   : > { %p1121_p1 = pneg %p1120_p0 }
  0x20   : > { %p1128_p9 = pnand %p1127_p7, %p1121_p1 }
  0x22   : > { %1131 = shalt.err (!%p1128_p9)
}
  0x23   : > { %s1571_s20 = smov 64   ;;  %s1285_s22 = smov 4  }
  0x24   : > { %1024 = dma.hbm_to_vmem [thread:$0]  (!%p1379_p5), %s1557_s1, 1024, %s1369_s13, [#allocation7], %s1571_s20, %s1571_s20, %s1285_s22  }
  0x25   : > { %s1587_s18 = smov (%p1384_p6, %s32_s18), 0  ;;  %s1132_s28 = scalar_lea.hbm %s1556_s0, 64 }
  0x26   : > { %p1133_p2 = scmp.ne.s32.totalorder %s1556_s0, %s1132_s28  ;;  %p1139_p12 = scmp.lt.u32.totalorder %s1132_s28, %s1556_s0 }
  0x28   : > { %p1135_p10 = pnand %p1133_p2, %p1396_p8 }
  0x2a   : > { %p1136_p11 = pneg %p1135_p10 }
  0x2c   : > { %p1141_p13 = pnand %p1139_p12, %p1136_p11 }
  0x2e   : > { %1144 = shalt.err (!%p1141_p13)
}
  0x2f   : > { %s1145_s13 = scalar_lea.vmem %s276_s21, 64  ;;  %p1153_p4 = scmp.lt.s32.totalorder %s276_s21, %s276_s21 }
  0x30   : > { %p1146_p6 = scmp.ne.s32.totalorder %s276_s21, %s1145_s13  ;;  %p1154_p7 = scmp.lt.s32.totalorder %s1145_s13, %s1145_s13 }
  0x32   : > { %p1148_p0 = pnand %p1146_p6, %p1396_p8  ;;  %p1155_p9 = por %p1154_p7, %p1153_p4 }
  0x34   : > { %p1149_p1 = pneg %p1148_p0 }
  0x36   : > { %p1156_p3 = pnand %p1155_p9, %p1149_p1 }
  0x38   : > { %1159 = shalt.err (!%p1156_p3)
}
  0x39   : > { %1021 = dma.hbm_to_vmem [thread:$0]  (!%p1379_p5), %s1556_s0, 64, %s276_s21, [#allocation4]  }
  0x3a   : > { %s1286_s10 = smov [#allocation8]   ;;  %s1287_s24 = smov [#allocation9]  }
  0x3b   : > { %s301_s14 = sshll.u32 %s1286_s10, 4  ;;  %s323_s25 = sshll.u32 %s1287_s24, 4  ;;  %s302_s14 = int_to_ptr.vmem [resolvable:$true] %s301_s14  ;;  %s324_s25 = int_to_ptr.vmem [resolvable:$true] %s323_s25 }
  0x3c   : > { %s1160_s29 = scalar_lea.hbm %s1559_s3, 2048 }
  0x3d   : > { %p1161_p3 = scmp.ne.s32.totalorder %s1559_s3, %s1160_s29  ;;  %p1167_p11 = scmp.lt.u32.totalorder %s1160_s29, %s1559_s3 }
  0x3f   : > { %p1163_p2 = pnand %p1161_p3, %p1396_p8 }
  0x41   : > { %p1164_p10 = pneg %p1163_p2 }
  0x43   : > { %p1169_p12 = pnand %p1167_p11, %p1164_p10 }
  0x45   : > { %1172 = shalt.err (!%p1169_p12)
}
  0x46   : > { %s1173_s21 = scalar_lea.vmem %s302_s14, 2048  ;;  %p1181_p1 = scmp.lt.s32.totalorder %s302_s14, %s302_s14 }
  0x47   : > { %p1174_p13 = scmp.ne.s32.totalorder %s302_s14, %s1173_s21  ;;  %p1182_p4 = scmp.lt.s32.totalorder %s1173_s21, %s1173_s21 }
  0x49   : > { %p1176_p6 = pnand %p1174_p13, %p1396_p8  ;;  %p1183_p7 = por %p1182_p4, %p1181_p1 }
  0x4b   : > { %p1177_p0 = pneg %p1176_p6 }
  0x4d   : > { %p1184_p9 = pnand %p1183_p7, %p1177_p0 }
  0x4f   : > { %1187 = shalt.err (!%p1184_p9)
}
  0x50   : > { %s1579_s23 = smov 64   ;;  %s1188_s28 = scalar_lea.hbm %s1563_s7, 1024 }
  0x51   : > { %1027 = dma.hbm_to_vmem [thread:$0]  (!%p1379_p5), %s1559_s3, 2048, %s302_s14, [#allocation7], %s1579_s23, %s1579_s23, %s1285_s22  }
  0x52   : > { %p1189_p3 = scmp.ne.s32.totalorder %s1563_s7, %s1188_s28  ;;  %p1195_p11 = scmp.lt.u32.totalorder %s1188_s28, %s1563_s7 }
  0x54   : > { %p1191_p2 = pnand %p1189_p3, %p1396_p8 }
  0x56   : > { %p1192_p10 = pneg %p1191_p2 }
  0x58   : > { %p1197_p12 = pnand %p1195_p11, %p1192_p10 }
  0x5a   : > { %1200 = shalt.err (!%p1197_p12)
}
  0x5b   : > { %s1201_s21 = scalar_lea.vmem %s324_s25, 1024  ;;  %p1209_p1 = scmp.lt.s32.totalorder %s324_s25, %s324_s25 }
  0x5c   : > { %p1202_p13 = scmp.ne.s32.totalorder %s324_s25, %s1201_s21  ;;  %p1210_p4 = scmp.lt.s32.totalorder %s1201_s21, %s1201_s21 }
  0x5e   : > { %p1204_p6 = pnand %p1202_p13, %p1396_p8  ;;  %p1211_p7 = por %p1210_p4, %p1209_p1 }
  0x60   : > { %p1205_p0 = pneg %p1204_p6 }
  0x62   : > { %p1212_p9 = pnand %p1211_p7, %p1205_p0 }
  0x64   : > { %1215 = shalt.err (!%p1212_p9)
}
  0x65   : > { %1030 = dma.hbm_to_vmem [thread:$0]  (!%p1379_p5), %s1563_s7, 1024, %s324_s25, [#allocation10], %s1579_s23, %s1579_s23, %s1285_s22  }
  0x66   : > { %p1580_p3 = scmp.ne.s32.totalorder %s1575_s16, 0 }
  0x67   : > { %p1581_p8 = scmp.ne.s32.totalorder (!%p1580_p3), %s1574_s15, 0 }
  0x68   : > { %342 = sbr.rel (%p1580_p3) target bundleno = 1030 (0x406), region = 56 }
  0x6f   : > { %1255 = dma.done.wait (%p1581_p8), [#allocation4], 64  }
  0x70   : > { %1257 = vsyncadd (%p1581_p8), [#allocation4], 4294967232 }
  0x71   : > { %1259 = dma.done.wait (%p1581_p8), [#allocation7], 3072  }
  0x72   : > { %1261 = vsyncadd (%p1581_p8), [#allocation7], 4294964224 }
  0x73   : > { %1263 = dma.done.wait (%p1581_p8), [#allocation10], 1024  }
  0x74   : > { %1265 = vsyncadd (%p1581_p8), [#allocation10], 4294966272  ;;  %p873_p5 = scmp.ne.s32.totalorder %s1272_s30, 0 }
  0x75   : > { %v1078_v0 = vld [vmem:[#allocation6] sm:$0xff] (!%p873_p5)   ;;  %v1288_v1 = vmov (!%p873_p5), 0.0   ;;  %v1079_v2 = vld [vmem:[#allocation6 + $0x8] sm:$0xff] (!%p873_p5)   ;;  %vm1289_vm0 = vmmov (!%p873_p5), 0   ;;  %v1080_v3 = vld [vmem:[#allocation6 + $0x10] sm:$0xff] (!%p873_p5)  }
  0x76   : > { %384 = sbr.rel (%p873_p5) target bundleno = 367 (0x16f), region = 76  ;;  %938 = vmatprep.subr.bf16.mxu0 (!%p873_p5), %v1288_v1  ;;  %954 = vmatprep.mubr.msk.bf16.mxu0 (!%p873_p5), %vm1289_vm0, %v1288_v1  ;;  %v1081_v4 = vld [vmem:[#allocation6 + $0x18] sm:$0xff] (!%p873_p5)   ;;  %v1082_v5 = vld [vmem:[#allocation6 + $0x20] sm:$0xff] (!%p873_p5)   ;;  %v1083_v6 = vld [vmem:[#allocation6 + $0x28] sm:$0xff] (!%p873_p5)  }
  0x77   : > { %939 = vmatpush3.bf16.msra.mxu0 (!%p873_p5), %v1078_v0  ;;  %v1084_v7 = vld [vmem:[#allocation6 + $0x30] sm:$0xff] (!%p873_p5)   ;;  %v1085_v8 = vld [vmem:[#allocation6 + $0x38] sm:$0xff] (!%p873_p5)  }
  0x78   : > { %940 = vmatprep.subr.bf16.mxu0 (!%p873_p5), %v1288_v1  ;;  %v385_v9 = vld [vmem:[#allocation3] sm:$0xf] (!%p873_p5)  ;;  %v874_v10 = vld [vmem:[%s1558_s2] ss:$0 sm:$0xff] (!%p873_p5) }
  0x7b   : > { %941 = vmatpush3.bf16.msra.mxu0 (!%p873_p5), %v1079_v2 }
  0x7c   : > { %942 = vmatprep.subr.bf16.mxu0 (!%p873_p5), %v1288_v1 }
  0x7f   : > { %943 = vmatpush3.bf16.msra.mxu0 %v1080_v3 }
  0x80   : > { %944 = vmatprep.subr.bf16.mxu0 %v1288_v1 }
  0x83   : > { %945 = vmatpush3.bf16.msra.mxu0 %v1081_v4 }
  0x84   : > { %946 = vmatprep.subr.bf16.mxu0 %v1288_v1 }
  0x87   : > { %947 = vmatpush3.bf16.msra.mxu0 %v1082_v5 }
  0x88   : > { %948 = vmatprep.subr.bf16.mxu0 %v1288_v1 }
  0x8b   : > { %949 = vmatpush3.bf16.msra.mxu0 %v1083_v6 }
  0x8c   : > { %950 = vmatprep.subr.bf16.mxu0 %v1288_v1 }
  0x8f   : > { %951 = vmatpush3.bf16.msra.mxu0 %v1084_v7 }
  0x90   : > { %952 = vmatprep.subr.bf16.mxu0 %v1288_v1 }
  0x93   : > { %953 = vmatpush3.bf16.msra.mxu0 %v1085_v8 }
  0x96   : > { %955 = vmatmul.mubr.bf16.vlgmr.msra.gmra.mrb[0].mxu0 %v385_v9 }
 0x169   : > { %v491_v11 = vpop.f32.mrb[0].mxu0 }
 0x16a   : > { %v492_v12 = vadd.f32 %v874_v10, %v491_v11  ;;  %v956_v13 = vpop.f32.mrb[1].mxu0 }
 0x16b   : > { %v494_v14 = vpop.f32.mrb[2].mxu0 }
 0x16c   : > { %v497_v15 = vmax.f32 %v492_v12, 0.0  ;;  %v957_v16 = vpop.f32.mrb[3].mxu0 }
 0x16e   : > { %498 = vst [vmem:[#allocation2] sm:$0xff] %v497_v15 }
 0x16f PF: > { %s910_s17 = sshll.u32 %s1272_s30, 6  ;;  %v1290_v17 = vmov 0.0   ;;  %vm1291_vm1 = vmmov 0   ;;  %s520_s23 = scalar_lea.vmem %s1560_s4, %s1272_s30 }
 0x170   : > { %958 = vmatprep.subr.bf16.mxu0 %v1290_v17  ;;  %974 = vmatprep.mubr.msk.bf16.mxu0 %vm1291_vm1, %v1290_v17  ;;  %s503_s27 = scalar_lea.vmem [#allocation8], %s910_s17  ;;  %v885_v28 = vld [vmem:[%s520_s23] ss:$0 sm:$0xff]  ;;  %s631_s26 = scalar_lea.vmem %s1561_s5, %s1272_s30 }
 0x171   : > { %v1086_v18 = vld [vmem:[%s503_s27] sm:$0xff]   ;;  %v1087_v19 = vld [vmem:[%s503_s27 + $0x8] sm:$0xff]   ;;  %v1088_v20 = vld [vmem:[%s503_s27 + $0x10] sm:$0xff]   ;;  %s640_s12 = scalar_lea.vmem %s1562_s6, %s1272_s30  ;;  %p896_p2 = scmp.ne.s32.totalorder %s1272_s30, 1 }
 0x172   : > { %959 = vmatpush3.bf16.msra.mxu0 %v1086_v18  ;;  %v1089_v21 = vld [vmem:[%s503_s27 + $0x18] sm:$0xff]   ;;  %v1090_v22 = vld [vmem:[%s503_s27 + $0x20] sm:$0xff]   ;;  %v1091_v23 = vld [vmem:[%s503_s27 + $0x28] sm:$0xff]   ;;  %v1292_v52 = vmov (!%p896_p2), 0.0   ;;  %vm1293_vm2 = vmmov (!%p896_p2), 0  }
 0x173   : > { %960 = vmatprep.subr.bf16.mxu0 %v1290_v17  ;;  %v1092_v24 = vld [vmem:[%s503_s27 + $0x30] sm:$0xff]   ;;  %v1093_v25 = vld [vmem:[%s503_s27 + $0x38] sm:$0xff]   ;;  %v894_v46 = vld [vmem:[%s631_s26] ss:$0 sm:$0xff] }
 0x174   : > { %v895_v48 = vld [vmem:[%s640_s12] ss:$0 sm:$0xff]  ;;  %v1096_v51 = vld [vmem:[#allocation9] sm:$0xff] (!%p896_p2)   ;;  %v1097_v53 = vld [vmem:[#allocation9 + $0x8] sm:$0xff] (!%p896_p2)  }
 0x175   : > { %v499_v26 = vld [vmem:[#allocation2] sm:$0xff]  ;;  %v1100_v56 = vld [vmem:[#allocation9 + $0x20] sm:$0xff] (!%p896_p2)   ;;  %v1101_v57 = vld [vmem:[#allocation9 + $0x28] sm:$0xff] (!%p896_p2)  }
 0x176   : > { %961 = vmatpush3.bf16.msra.mxu0 %v1087_v19  ;;  %v500_v27 = vpack.c.bf16 %v499_v26, %v499_v26  ;;  %v1098_v54 = vld [vmem:[#allocation9 + $0x10] sm:$0xff] (!%p896_p2)   ;;  %v1099_v55 = vld [vmem:[#allocation9 + $0x18] sm:$0xff] (!%p896_p2)  }
 0x177   : > { %962 = vmatprep.subr.bf16.mxu0 %v1290_v17  ;;  %v1102_v58 = vld [vmem:[#allocation9 + $0x30] sm:$0xff] (!%p896_p2)   ;;  %v1103_v59 = vld [vmem:[#allocation9 + $0x38] sm:$0xff] (!%p896_p2)  }
 0x178   : > { %v897_v61 = vld [vmem:[%s1564_s8] ss:$0 sm:$0xff] (!%p896_p2) }
 0x17a   : > { %963 = vmatpush3.bf16.msra.mxu0 %v1088_v20 }
 0x17b   : > { %964 = vmatprep.subr.bf16.mxu0 %v1290_v17 }
 0x17e   : > { %965 = vmatpush3.bf16.msra.mxu0 %v1089_v21 }
 0x17f   : > { %966 = vmatprep.subr.bf16.mxu0 %v1290_v17 }
 0x182   : > { %967 = vmatpush3.bf16.msra.mxu0 %v1090_v22 }
 0x183   : > { %968 = vmatprep.subr.bf16.mxu0 %v1290_v17 }
 0x186   : > { %969 = vmatpush3.bf16.msra.mxu0 %v1091_v23 }
 0x187   : > { %970 = vmatprep.subr.bf16.mxu0 %v1290_v17 }
 0x18a   : > { %971 = vmatpush3.bf16.msra.mxu0 %v1092_v24 }
 0x18b   : > { %972 = vmatprep.subr.bf16.mxu0 %v1290_v17 }
 0x18e   : > { %973 = vmatpush3.bf16.msra.mxu0 %v1093_v25 }
 0x18f   : > { %978 = vmatprep.subr.bf16.mxu0 (!%p896_p2), %v1292_v52 }
 0x191   : > { %975 = vmatmul.mubr.bf16.vlgmr.msra.gmra.mrb[0].mxu0 %v500_v27 }
 0x192   : > { %979 = vmatpush3.bf16.msra.mxu0 (!%p896_p2), %v1096_v51  ;;  %994 = vmatprep.mubr.msk.bf16.mxu0 (!%p896_p2), %vm1293_vm2, %v1292_v52 }
 0x193   : > { %980 = vmatprep.subr.bf16.mxu0 (!%p896_p2), %v1292_v52 }
 0x196   : > { %981 = vmatpush3.bf16.msra.mxu0 (!%p896_p2), %v1097_v53 }
 0x197   : > { %982 = vmatprep.subr.bf16.mxu0 (!%p896_p2), %v1292_v52 }
 0x19a   : > { %983 = vmatpush3.bf16.msra.mxu0 (!%p896_p2), %v1098_v54 }
 0x19b   : > { %984 = vmatprep.subr.bf16.mxu0 (!%p896_p2), %v1292_v52 }
 0x19e   : > { %985 = vmatpush3.bf16.msra.mxu0 (!%p896_p2), %v1099_v55 }
 0x19f   : > { %986 = vmatprep.subr.bf16.mxu0 (!%p896_p2), %v1292_v52 }
 0x1a2   : > { %987 = vmatpush3.bf16.msra.mxu0 (!%p896_p2), %v1100_v56 }
 0x1a3   : > { %988 = vmatprep.subr.bf16.mxu0 (!%p896_p2), %v1292_v52 }
 0x1a6   : > { %989 = vmatpush3.bf16.msra.mxu0 (!%p896_p2), %v1101_v57 }
 0x1a7   : > { %990 = vmatprep.subr.bf16.mxu0 (!%p896_p2), %v1292_v52 }
 0x1aa   : > { %991 = vmatpush3.bf16.msra.mxu0 (!%p896_p2), %v1102_v58 }
 0x1ab   : > { %992 = vmatprep.subr.bf16.mxu0 (!%p896_p2), %v1292_v52 }
 0x1ae   : > { %993 = vmatpush3.bf16.msra.mxu0 (!%p896_p2), %v1103_v59 }
 0x264   : > { %v610_v29 = vpop.f32.mrb[0].mxu0 }
 0x265   : > { %v611_v30 = vadd.f32 %v885_v28, %v610_v29  ;;  %v976_v31 = vpop.f32.mrb[1].mxu0 }
 0x266   : > { %v613_v32 = vpop.f32.mrb[2].mxu0 }
 0x267   : > { %v616_v33 = vmax.f32 %v611_v30, 0.0  ;;  %v977_v34 = vpop.f32.mrb[3].mxu0 }
 0x269   : > { %617 = vadd.xlane.f32.xlu0 %v616_v33  ;;  %v620_v35 = vmul.f32 %v616_v33, %v616_v33 }
 0x26d   : > { %621 = vadd.xlane.f32.xlu0 %v620_v35 }
 0x2f6   : > { %v618_v36 = vpop.xlane.xlu0 %617 }
 0x2f7   : > { %v619_v37 = vmul.f32 0.03125, %v618_v36 }
 0x2f9   : > { %v624_v39 = vmul.f32 %v619_v37, %v619_v37  ;;  %v627_v44 = vsub.f32 %v616_v33, %v619_v37 }
 0x2fa   : > { %v622_v38 = vpop.xlane.xlu0 %621 }
 0x2fb   : > { %v623_v40 = vmul.f32 0.03125, %v622_v38 }
 0x2fd   : > { %v625_v41 = vsub.f32 %v623_v40, %v624_v39 }
 0x2ff   : > { %v626_v42 = vmax.f32 %v625_v41, 0.0 }
 0x301   : > { %v628_v43 = vadd.f32 1e-05, %v626_v42 }
 0x303   : > { %1094 = vrsqrt.f32 %v628_v43 }
 0x30d   : > { %v1095_v45 = vpop.eup %1094 }
 0x30e   : > { %v630_v47 = vmul.f32 %v1095_v45, %v627_v44  ;;  %653 = sbr.rel (%p896_p2) target bundleno = 1005 (0x3ed), region = 80 }
 0x310   : > { %v639_v49 = vmul.f32 %v894_v46, %v630_v47 }
 0x312   : > { %v648_v50 = vadd.f32 %v895_v48, %v639_v49 }
 0x314   : > { %649 = vst [vmem:[#allocation2] sm:$0xff] %v648_v50  ;;  %v654_v60 = vpack.c.bf16 (!%p896_p2), %v648_v50, %v648_v50 }
 0x316   : > { %995 = vmatmul.mubr.bf16.vlgmr.msra.gmra.mrb[0].mxu0 %v654_v60 }
 0x3e9   : > { %v760_v62 = vpop.f32.mrb[0].mxu0 }
 0x3ea   : > { %v761_v63 = vadd.f32 %v897_v61, %v760_v62  ;;  %v996_v0 = vpop.f32.mrb[1].mxu0 }
 0x3eb   : > { %v763_v1 = vpop.f32.mrb[2].mxu0 }
 0x3ec   : > { %766 = vst [vmem:[#allocation11] sm:$0xff] %v761_v63  ;;  %v997_v2 = vpop.f32.mrb[3].mxu0 }
 0x3ed PF: > { %s1582_s19 = sadd.s32 4294967295, %s1280_s11   ;;  %s1294_s14 = smov [#allocation11]  }
 0x3ee   : > { %p1521_p10 = scmp.eq.s32.totalorder %s1582_s19, 1  ;;  %s776_s20 = sshll.u32 %s1294_s14, 4  ;;  %s777_s20 = int_to_ptr.vmem [resolvable:$true] %s776_s20 }
 0x3ef   : > { %s1216_s15 = scalar_lea.vmem %s777_s20, 128  ;;  %p1223_p6 = scmp.lt.s32.totalorder %s777_s20, %s777_s20 }
 0x3f0   : > { %p1217_p11 = scmp.ne.s32.totalorder %s777_s20, %s1216_s15  ;;  %p1224_p0 = scmp.lt.s32.totalorder %s1216_s15, %s1216_s15 }
 0x3f2   : > { %p1218_p12 = pnand %p1217_p11, %p1521_p10  ;;  %p1225_p1 = por %p1224_p0, %p1223_p6 }
 0x3f4   : > { %p1219_p13 = pneg %p1218_p12 }
 0x3f6   : > { %p1226_p4 = pnand %p1225_p1, %p1219_p13 }
 0x3f8   : > { %1229 = shalt.err (!%p1226_p4)
}
 0x3f9   : > { %s1230_s27 = scalar_lea.hbm %s1565_s9, 128 }
 0x3fa   : > { %p1231_p7 = scmp.ne.s32.totalorder %s1565_s9, %s1230_s27  ;;  %p1236_p8 = scmp.lt.u32.totalorder %s1230_s27, %s1565_s9 }
 0x3fc   : > { %p1232_p9 = pnand %p1231_p7, %p1521_p10 }
 0x3fe   : > { %p1233_p3 = pneg %p1232_p9 }
 0x400   : > { %p1238_p5 = pnand %p1236_p8, %p1233_p3 }
 0x402   : > { %1241 = shalt.err (!%p1238_p5)
}
 0x403   : > { %1015 = dma.vmem_to_hbm [thread:$0]  (%p1521_p10), %s777_s20, 128, %s1565_s9, [#allocation5]  }
 0x404   : > { %1267 = dma.done.wait (%p1521_p10), [#allocation5], 128  }
 0x405   : > { %1269 = vsyncadd (%p1521_p10), [#allocation5], 4294967168 }
 0x406 PF: > { %s23_s11 = sadd.s32 1, %s1280_s11   ;;  %s1584_s30 = sld [smem:[#allocation16_spill]] }
 0x407   : > { %p20_p2 = scmp.ge.s32.totalorder %s23_s11, 4   ;;  %s1585_s10 = smov %s1587_s18 }
 0x409   :  { %22 = sbr.rel (!%p20_p2) target bundleno = 5 (0x5), region = 111 }
 0x410   :  { %789 = vsyncpa [#allocation4], 1 }
 0x411   :  { %791 = vsyncpa [#allocation4 + $0x1], 1 }
 0x412   :  { %792 = vsyncpa [#allocation7], 1 }
 0x413   :  { %793 = vsyncpa [#allocation10], 1 }
 0x414   :  { %794 = vsyncpa [#allocation5], 1 }
 0x415   :  { %796 = vsyncpa [#allocation5 + $0x1], 1 }

// kernel: tpu_custom_call.1
= control target key start
LH: loop header
LB: loop body
LE: loop exit
PB: predicated region body
PF: predicated region fallthrough
CT: control target
= control target key end

     0   :  { %14 = vsyncpa [#allocation4], 0  ;;  %s1556_s0 = inlined_call_operand.hbm [shape: bf16[8,128], index: 0, kind: input, shape index: {}]   ;;  %s1557_s1 = inlined_call_operand.hbm [shape: bf16[128,128], index: 1, kind: input, shape index: {}]   ;;  %s1558_s2 = inlined_call_operand.vmem [shape: f32[1,128], index: 2, kind: input, shape index: {}]   ;;  %s1559_s3 = inlined_call_operand.hbm [shape: bf16[2,128,128], index: 3, kind: input, shape index: {}]   ;;  %s1560_s4 = inlined_call_operand.vmem [shape: f32[2,1,128], index: 4, kind: input, shape index: {}]   ;;  %s1561_s5 = inlined_call_operand.vmem [shape: f32[2,1,128], index: 5, kind: input, shape index: {}]   ;;  %s1562_s6 = inlined_call_operand.vmem [shape: f32[2,1,128], index: 6, kind: input, shape index: {}]   ;;  %s1563_s7 = inlined_call_operand.hbm [shape: bf16[128,128], index: 7, kind: input, shape index: {}]   ;;  %s1564_s8 = inlined_call_operand.vmem [shape: f32[1,128], index: 8, kind: input, shape index: {}]   ;;  %s1565_s9 = inlined_call_operand.hbm [shape: f32[8,128], index: 9, kind: output, shape index: {}]  }
   0x1   :  { %15 = vsyncpa [#allocation7], 0 }
   0x2   :  { %16 = vsyncpa [#allocation10], 0 }
   0x3   :  { %17 = vsyncpa [#allocation5], 0  ;;  %s1345_s30 = smov 0   ;;  %s1347_s10 = smov 0  }
   0x4   :  { %s1349_s11 = smov 0  }
   0x5 LB: > { %1573 = sst [smem:[#allocation16_spill]] %s1276_s10  ;;  %s1282_s12 = smov [#allocation6]   ;;  %s1280_s11 = sphi %s1349_s11, %s23_s11   ;;  %s1276_s10 = sphi %s1347_s10, %s1585_s10   ;;  %s1272_s30 = sphi %s1345_s30, %s1584_s30  }
   0x6   : > { %s285_s13 = sshll.u32 %s1282_s12, 4  ;;  %s1568_s14 = sadd.s32 4294967295, %s1280_s11   ;;  %s1369_s13 = int_to_ptr.vmem [resolvable:$true] %s285_s13 }
   0x7   : > { %p863_p0 = scmp.ge.s32.totalorder %s1280_s11, 1  ;;  %p260_p1 = scmp.lt.s32.totalorder %s1280_s11, 3 }
   0x8   : > { %p1365_p2 = scmp.eq.s32.totalorder %s1568_s14, 0  ;;  %s32_s18 = sadd.s32 1, %s1276_s10 }
   0x9   : > { %p1371_p3 = pnand %p863_p0, %p260_p1  ;;  %p1384_p6 = scmp.ge.s32.totalorder %s32_s18, 2 }
   0xa   : > { %s1574_s15 = scalar_select %p1365_p2, 1, 0 }
   0xb   : > { %s1575_s16 = scalar_select %p1371_p3, 1, 0 }
   0xc   : > { %p1018_p4 = pneg %p1371_p3  ;;  %s1283_s20 = smov [#allocation3]  }
   0xd   : > { %s275_s21 = sshll.u32 %s1283_s20, 4  ;;  %s1104_s24 = scalar_lea.hbm %s1557_s1, 1024  ;;  %s276_s21 = int_to_ptr.vmem [resolvable:$true] %s275_s21 }
   0xe   : > { %p1379_p5 = pnand %p1365_p2, %p1018_p4  ;;  %p1105_p7 = scmp.ne.s32.totalorder %s1557_s1, %s1104_s24 }
   0xf   : > { %p1111_p11 = scmp.lt.u32.totalorder %s1104_s24, %s1557_s1 }
  0x10   : > { %p1396_p8 = pneg %p1379_p5 }
  0x12   : > { %p1107_p9 = pnand %p1396_p8, %p1105_p7 }
  0x14   : > { %p1108_p10 = pneg %p1107_p9 }
  0x16   : > { %p1113_p12 = pnand %p1111_p11, %p1108_p10 }
  0x18   : > { %1116 = shalt.err (!%p1113_p12)
}
  0x19   : > { %s1117_s12 = scalar_lea.vmem %s1369_s13, 1024  ;;  %p1125_p4 = scmp.lt.s32.totalorder %s1369_s13, %s1369_s13 }
  0x1a   : > { %p1118_p13 = scmp.ne.s32.totalorder %s1369_s13, %s1117_s12  ;;  %p1126_p2 = scmp.lt.s32.totalorder %s1117_s12, %s1117_s12 }
  0x1c   : > { %p1120_p0 = pnand %p1118_p13, %p1396_p8  ;;  %p1127_p7 = por %p1126_p2, %p1125_p4 }
  0x1e   : > { %p1121_p1 = pneg %p1120_p0 }
  0x20   : > { %p1128_p9 = pnand %p1127_p7, %p1121_p1 }
  0x22   : > { %1131 = shalt.err (!%p1128_p9)
}
  0x23   : > { %s1571_s20 = smov 64   ;;  %s1285_s22 = smov 4  }
  0x24   : > { %1024 = dma.hbm_to_vmem [thread:$0]  (!%p1379_p5), %s1557_s1, 1024, %s1369_s13, [#allocation7], %s1571_s20, %s1571_s20, %s1285_s22  }
  0x25   : > { %s1587_s18 = smov (%p1384_p6, %s32_s18), 0  ;;  %s1132_s28 = scalar_lea.hbm %s1556_s0, 64 }
  0x26   : > { %p1133_p2 = scmp.ne.s32.totalorder %s1556_s0, %s1132_s28  ;;  %p1139_p12 = scmp.lt.u32.totalorder %s1132_s28, %s1556_s0 }
  0x28   : > { %p1135_p10 = pnand %p1133_p2, %p1396_p8 }
  0x2a   : > { %p1136_p11 = pneg %p1135_p10 }
  0x2c   : > { %p1141_p13 = pnand %p1139_p12, %p1136_p11 }
  0x2e   : > { %1144 = shalt.err (!%p1141_p13)
}
  0x2f   : > { %s1145_s13 = scalar_lea.vmem %s276_s21, 64  ;;  %p1153_p4 = scmp.lt.s32.totalorder %s276_s21, %s276_s21 }
  0x30   : > { %p1146_p6 = scmp.ne.s32.totalorder %s276_s21, %s1145_s13  ;;  %p1154_p7 = scmp.lt.s32.totalorder %s1145_s13, %s1145_s13 }
  0x32   : > { %p1148_p0 = pnand %p1146_p6, %p1396_p8  ;;  %p1155_p9 = por %p1154_p7, %p1153_p4 }
  0x34   : > { %p1149_p1 = pneg %p1148_p0 }
  0x36   : > { %p1156_p3 = pnand %p1155_p9, %p1149_p1 }
  0x38   : > { %1159 = shalt.err (!%p1156_p3)
}
  0x39   : > { %1021 = dma.hbm_to_vmem [thread:$0]  (!%p1379_p5), %s1556_s0, 64, %s276_s21, [#allocation4]  }
  0x3a   : > { %s1286_s10 = smov [#allocation8]   ;;  %s1287_s24 = smov [#allocation9]  }
  0x3b   : > { %s301_s14 = sshll.u32 %s1286_s10, 4  ;;  %s323_s25 = sshll.u32 %s1287_s24, 4  ;;  %s302_s14 = int_to_ptr.vmem [resolvable:$true] %s301_s14  ;;  %s324_s25 = int_to_ptr.vmem [resolvable:$true] %s323_s25 }
  0x3c   : > { %s1160_s29 = scalar_lea.hbm %s1559_s3, 2048 }
  0x3d   : > { %p1161_p3 = scmp.ne.s32.totalorder %s1559_s3, %s1160_s29  ;;  %p1167_p11 = scmp.lt.u32.totalorder %s1160_s29, %s1559_s3 }
  0x3f   : > { %p1163_p2 = pnand %p1161_p3, %p1396_p8 }
  0x41   : > { %p1164_p10 = pneg %p1163_p2 }
  0x43   : > { %p1169_p12 = pnand %p1167_p11, %p1164_p10 }
  0x45   : > { %1172 = shalt.err (!%p1169_p12)
}
  0x46   : > { %s1173_s21 = scalar_lea.vmem %s302_s14, 2048  ;;  %p1181_p1 = scmp.lt.s32.totalorder %s302_s14, %s302_s14 }
  0x47   : > { %p1174_p13 = scmp.ne.s32.totalorder %s302_s14, %s1173_s21  ;;  %p1182_p4 = scmp.lt.s32.totalorder %s1173_s21, %s1173_s21 }
  0x49   : > { %p1176_p6 = pnand %p1174_p13, %p1396_p8  ;;  %p1183_p7 = por %p1182_p4, %p1181_p1 }
  0x4b   : > { %p1177_p0 = pneg %p1176_p6 }
  0x4d   : > { %p1184_p9 = pnand %p1183_p7, %p1177_p0 }
  0x4f   : > { %1187 = shalt.err (!%p1184_p9)
}
  0x50   : > { %s1579_s23 = smov 64   ;;  %s1188_s28 = scalar_lea.hbm %s1563_s7, 1024 }
  0x51   : > { %1027 = dma.hbm_to_vmem [thread:$0]  (!%p1379_p5), %s1559_s3, 2048, %s302_s14, [#allocation7], %s1579_s23, %s1579_s23, %s1285_s22  }
  0x52   : > { %p1189_p3 = scmp.ne.s32.totalorder %s1563_s7, %s1188_s28  ;;  %p1195_p11 = scmp.lt.u32.totalorder %s1188_s28, %s1563_s7 }
  0x54   : > { %p1191_p2 = pnand %p1189_p3, %p1396_p8 }
  0x56   : > { %p1192_p10 = pneg %p1191_p2 }
  0x58   : > { %p1197_p12 = pnand %p1195_p11, %p1192_p10 }
  0x5a   : > { %1200 = shalt.err (!%p1197_p12)
}
  0x5b   : > { %s1201_s21 = scalar_lea.vmem %s324_s25, 1024  ;;  %p1209_p1 = scmp.lt.s32.totalorder %s324_s25, %s324_s25 }
  0x5c   : > { %p1202_p13 = scmp.ne.s32.totalorder %s324_s25, %s1201_s21  ;;  %p1210_p4 = scmp.lt.s32.totalorder %s1201_s21, %s1201_s21 }
  0x5e   : > { %p1204_p6 = pnand %p1202_p13, %p1396_p8  ;;  %p1211_p7 = por %p1210_p4, %p1209_p1 }
  0x60   : > { %p1205_p0 = pneg %p1204_p6 }
  0x62   : > { %p1212_p9 = pnand %p1211_p7, %p1205_p0 }
  0x64   : > { %1215 = shalt.err (!%p1212_p9)
}
  0x65   : > { %1030 = dma.hbm_to_vmem [thread:$0]  (!%p1379_p5), %s1563_s7, 1024, %s324_s25, [#allocation10], %s1579_s23, %s1579_s23, %s1285_s22  }
  0x66   : > { %p1580_p3 = scmp.ne.s32.totalorder %s1575_s16, 0 }
  0x67   : > { %p1581_p8 = scmp.ne.s32.totalorder (!%p1580_p3), %s1574_s15, 0 }
  0x68   : > { %342 = sbr.rel (%p1580_p3) target bundleno = 1030 (0x406), region = 56 }
  0x6f   : > { %1255 = dma.done.wait (%p1581_p8), [#allocation4], 64  }
  0x70   : > { %1257 = vsyncadd (%p1581_p8), [#allocation4], 4294967232 }
  0x71   : > { %1259 = dma.done.wait (%p1581_p8), [#allocation7], 3072  }
  0x72   : > { %1261 = vsyncadd (%p1581_p8), [#allocation7], 4294964224 }
  0x73   : > { %1263 = dma.done.wait (%p1581_p8), [#allocation10], 1024  }
  0x74   : > { %1265 = vsyncadd (%p1581_p8), [#allocation10], 4294966272  ;;  %p873_p5 = scmp.ne.s32.totalorder %s1272_s30, 0 }
  0x75   : > { %v1078_v0 = vld [vmem:[#allocation6] sm:$0xff] (!%p873_p5)   ;;  %v1288_v1 = vmov (!%p873_p5), 0.0   ;;  %v1079_v2 = vld [vmem:[#allocation6 + $0x8] sm:$0xff] (!%p873_p5)   ;;  %vm1289_vm0 = vmmov (!%p873_p5), 0   ;;  %v1080_v3 = vld [vmem:[#allocation6 + $0x10] sm:$0xff] (!%p873_p5)  }
  0x76   : > { %384 = sbr.rel (%p873_p5) target bundleno = 367 (0x16f), region = 76  ;;  %938 = vmatprep.subr.bf16.mxu0 (!%p873_p5), %v1288_v1  ;;  %954 = vmatprep.mubr.msk.bf16.mxu0 (!%p873_p5), %vm1289_vm0, %v1288_v1  ;;  %v1081_v4 = vld [vmem:[#allocation6 + $0x18] sm:$0xff] (!%p873_p5)   ;;  %v1082_v5 = vld [vmem:[#allocation6 + $0x20] sm:$0xff] (!%p873_p5)   ;;  %v1083_v6 = vld [vmem:[#allocation6 + $0x28] sm:$0xff] (!%p873_p5)  }
  0x77   : > { %939 = vmatpush3.bf16.msra.mxu0 (!%p873_p5), %v1078_v0  ;;  %v1084_v7 = vld [vmem:[#allocation6 + $0x30] sm:$0xff] (!%p873_p5)   ;;  %v1085_v8 = vld [vmem:[#allocation6 + $0x38] sm:$0xff] (!%p873_p5)  }
  0x78   : > { %940 = vmatprep.subr.bf16.mxu0 (!%p873_p5), %v1288_v1  ;;  %v385_v9 = vld [vmem:[#allocation3] sm:$0xf] (!%p873_p5)  ;;  %v874_v10 = vld [vmem:[%s1558_s2] ss:$0 sm:$0xff] (!%p873_p5) }
  0x7b   : > { %941 = vmatpush3.bf16.msra.mxu0 (!%p873_p5), %v1079_v2 }
  0x7c   : > { %942 = vmatprep.subr.bf16.mxu0 (!%p873_p5), %v1288_v1 }
  0x7f   : > { %943 = vmatpush3.bf16.msra.mxu0 %v1080_v3 }
  0x80   : > { %944 = vmatprep.subr.bf16.mxu0 %v1288_v1 }
  0x83   : > { %945 = vmatpush3.bf16.msra.mxu0 %v1081_v4 }
  0x84   : > { %946 = vmatprep.subr.bf16.mxu0 %v1288_v1 }
  0x87   : > { %947 = vmatpush3.bf16.msra.mxu0 %v1082_v5 }
  0x88   : > { %948 = vmatprep.subr.bf16.mxu0 %v1288_v1 }
  0x8b   : > { %949 = vmatpush3.bf16.msra.mxu0 %v1083_v6 }
  0x8c   : > { %950 = vmatprep.subr.bf16.mxu0 %v1288_v1 }
  0x8f   : > { %951 = vmatpush3.bf16.msra.mxu0 %v1084_v7 }
  0x90   : > { %952 = vmatprep.subr.bf16.mxu0 %v1288_v1 }
  0x93   : > { %953 = vmatpush3.bf16.msra.mxu0 %v1085_v8 }
  0x96   : > { %955 = vmatmul.mubr.bf16.vlgmr.msra.gmra.mrb[0].mxu0 %v385_v9 }
 0x169   : > { %v491_v11 = vpop.f32.mrb[0].mxu0 }
 0x16a   : > { %v492_v12 = vadd.f32 %v874_v10, %v491_v11  ;;  %v956_v13 = vpop.f32.mrb[1].mxu0 }
 0x16b   : > { %v494_v14 = vpop.f32.mrb[2].mxu0 }
 0x16c   : > { %v497_v15 = vmax.f32 %v492_v12, 0.0  ;;  %v957_v16 = vpop.f32.mrb[3].mxu0 }
 0x16e   : > { %498 = vst [vmem:[#allocation2] sm:$0xff] %v497_v15 }
 0x16f PF: > { %s910_s17 = sshll.u32 %s1272_s30, 6  ;;  %v1290_v17 = vmov 0.0   ;;  %vm1291_vm1 = vmmov 0   ;;  %s520_s23 = scalar_lea.vmem %s1560_s4, %s1272_s30 }
 0x170   : > { %958 = vmatprep.subr.bf16.mxu0 %v1290_v17  ;;  %974 = vmatprep.mubr.msk.bf16.mxu0 %vm1291_vm1, %v1290_v17  ;;  %s503_s27 = scalar_lea.vmem [#allocation8], %s910_s17  ;;  %v885_v28 = vld [vmem:[%s520_s23] ss:$0 sm:$0xff]  ;;  %s631_s26 = scalar_lea.vmem %s1561_s5, %s1272_s30 }
 0x171   : > { %v1086_v18 = vld [vmem:[%s503_s27] sm:$0xff]   ;;  %v1087_v19 = vld [vmem:[%s503_s27 + $0x8] sm:$0xff]   ;;  %v1088_v20 = vld [vmem:[%s503_s27 + $0x10] sm:$0xff]   ;;  %s640_s12 = scalar_lea.vmem %s1562_s6, %s1272_s30  ;;  %p896_p2 = scmp.ne.s32.totalorder %s1272_s30, 1 }
 0x172   : > { %959 = vmatpush3.bf16.msra.mxu0 %v1086_v18  ;;  %v1089_v21 = vld [vmem:[%s503_s27 + $0x18] sm:$0xff]   ;;  %v1090_v22 = vld [vmem:[%s503_s27 + $0x20] sm:$0xff]   ;;  %v1091_v23 = vld [vmem:[%s503_s27 + $0x28] sm:$0xff]   ;;  %v1292_v52 = vmov (!%p896_p2), 0.0   ;;  %vm1293_vm2 = vmmov (!%p896_p2), 0  }
 0x173   : > { %960 = vmatprep.subr.bf16.mxu0 %v1290_v17  ;;  %v1092_v24 = vld [vmem:[%s503_s27 + $0x30] sm:$0xff]   ;;  %v1093_v25 = vld [vmem:[%s503_s27 + $0x38] sm:$0xff]   ;;  %v894_v46 = vld [vmem:[%s631_s26] ss:$0 sm:$0xff] }
 0x174   : > { %v895_v48 = vld [vmem:[%s640_s12] ss:$0 sm:$0xff]  ;;  %v1096_v51 = vld [vmem:[#allocation9] sm:$0xff] (!%p896_p2)   ;;  %v1097_v53 = vld [vmem:[#allocation9 + $0x8] sm:$0xff] (!%p896_p2)  }
 0x175   : > { %v499_v26 = vld [vmem:[#allocation2] sm:$0xff]  ;;  %v1100_v56 = vld [vmem:[#allocation9 + $0x20] sm:$0xff] (!%p896_p2)   ;;  %v1101_v57 = vld [vmem:[#allocation9 + $0x28] sm:$0xff] (!%p896_p2)  }
 0x176   : > { %961 = vmatpush3.bf16.msra.mxu0 %v1087_v19  ;;  %v500_v27 = vpack.c.bf16 %v499_v26, %v499_v26  ;;  %v1098_v54 = vld [vmem:[#allocation9 + $0x10] sm:$0xff] (!%p896_p2)   ;;  %v1099_v55 = vld [vmem:[#allocation9 + $0x18] sm:$0xff] (!%p896_p2)  }
 0x177   : > { %962 = vmatprep.subr.bf16.mxu0 %v1290_v17  ;;  %v1102_v58 = vld [vmem:[#allocation9 + $0x30] sm:$0xff] (!%p896_p2)   ;;  %v1103_v59 = vld [vmem:[#allocation9 + $0x38] sm:$0xff] (!%p896_p2)  }
 0x178   : > { %v897_v61 = vld [vmem:[%s1564_s8] ss:$0 sm:$0xff] (!%p896_p2) }
 0x17a   : > { %963 = vmatpush3.bf16.msra.mxu0 %v1088_v20 }
 0x17b   : > { %964 = vmatprep.subr.bf16.mxu0 %v1290_v17 }
 0x17e   : > { %965 = vmatpush3.bf16.msra.mxu0 %v1089_v21 }
 0x17f   : > { %966 = vmatprep.subr.bf16.mxu0 %v1290_v17 }
 0x182   : > { %967 = vmatpush3.bf16.msra.mxu0 %v1090_v22 }
 0x183   : > { %968 = vmatprep.subr.bf16.mxu0 %v1290_v17 }
 0x186   : > { %969 = vmatpush3.bf16.msra.mxu0 %v1091_v23 }
 0x187   : > { %970 = vmatprep.subr.bf16.mxu0 %v1290_v17 }
 0x18a   : > { %971 = vmatpush3.bf16.msra.mxu0 %v1092_v24 }
 0x18b   : > { %972 = vmatprep.subr.bf16.mxu0 %v1290_v17 }
 0x18e   : > { %973 = vmatpush3.bf16.msra.mxu0 %v1093_v25 }
 0x18f   : > { %978 = vmatprep.subr.bf16.mxu0 (!%p896_p2), %v1292_v52 }
 0x191   : > { %975 = vmatmul.mubr.bf16.vlgmr.msra.gmra.mrb[0].mxu0 %v500_v27 }
 0x192   : > { %979 = vmatpush3.bf16.msra.mxu0 (!%p896_p2), %v1096_v51  ;;  %994 = vmatprep.mubr.msk.bf16.mxu0 (!%p896_p2), %vm1293_vm2, %v1292_v52 }
 0x193   : > { %980 = vmatprep.subr.bf16.mxu0 (!%p896_p2), %v1292_v52 }
 0x196   : > { %981 = vmatpush3.bf16.msra.mxu0 (!%p896_p2), %v1097_v53 }
 0x197   : > { %982 = vmatprep.subr.bf16.mxu0 (!%p896_p2), %v1292_v52 }
 0x19a   : > { %983 = vmatpush3.bf16.msra.mxu0 (!%p896_p2), %v1098_v54 }
 0x19b   : > { %984 = vmatprep.subr.bf16.mxu0 (!%p896_p2), %v1292_v52 }
 0x19e   : > { %985 = vmatpush3.bf16.msra.mxu0 (!%p896_p2), %v1099_v55 }
 0x19f   : > { %986 = vmatprep.subr.bf16.mxu0 (!%p896_p2), %v1292_v52 }
 0x1a2   : > { %987 = vmatpush3.bf16.msra.mxu0 (!%p896_p2), %v1100_v56 }
 0x1a3   : > { %988 = vmatprep.subr.bf16.mxu0 (!%p896_p2), %v1292_v52 }
 0x1a6   : > { %989 = vmatpush3.bf16.msra.mxu0 (!%p896_p2), %v1101_v57 }
 0x1a7   : > { %990 = vmatprep.subr.bf16.mxu0 (!%p896_p2), %v1292_v52 }
 0x1aa   : > { %991 = vmatpush3.bf16.msra.mxu0 (!%p896_p2), %v1102_v58 }
 0x1ab   : > { %992 = vmatprep.subr.bf16.mxu0 (!%p896_p2), %v1292_v52 }
 0x1ae   : > { %993 = vmatpush3.bf16.msra.mxu0 (!%p896_p2), %v1103_v59 }
 0x264   : > { %v610_v29 = vpop.f32.mrb[0].mxu0 }
 0x265   : > { %v611_v30 = vadd.f32 %v885_v28, %v610_v29  ;;  %v976_v31 = vpop.f32.mrb[1].mxu0 }
 0x266   : > { %v613_v32 = vpop.f32.mrb[2].mxu0 }
 0x267   : > { %v616_v33 = vmax.f32 %v611_v30, 0.0  ;;  %v977_v34 = vpop.f32.mrb[3].mxu0 }
 0x269   : > { %617 = vadd.xlane.f32.xlu0 %v616_v33  ;;  %v620_v35 = vmul.f32 %v616_v33, %v616_v33 }
 0x26d   : > { %621 = vadd.xlane.f32.xlu0 %v620_v35 }
 0x2f6   : > { %v618_v36 = vpop.xlane.xlu0 %617 }
 0x2f7   : > { %v619_v37 = vmul.f32 0.03125, %v618_v36 }
 0x2f9   : > { %v624_v39 = vmul.f32 %v619_v37, %v619_v37  ;;  %v627_v44 = vsub.f32 %v616_v33, %v619_v37 }
 0x2fa   : > { %v622_v38 = vpop.xlane.xlu0 %621 }
 0x2fb   : > { %v623_v40 = vmul.f32 0.03125, %v622_v38 }
 0x2fd   : > { %v625_v41 = vsub.f32 %v623_v40, %v624_v39 }
 0x2ff   : > { %v626_v42 = vmax.f32 %v625_v41, 0.0 }
 0x301   : > { %v628_v43 = vadd.f32 1e-05, %v626_v42 }
 0x303   : > { %1094 = vrsqrt.f32 %v628_v43 }
 0x30d   : > { %v1095_v45 = vpop.eup %1094 }
 0x30e   : > { %v630_v47 = vmul.f32 %v1095_v45, %v627_v44  ;;  %653 = sbr.rel (%p896_p2) target bundleno = 1005 (0x3ed), region = 80 }
 0x310   : > { %v639_v49 = vmul.f32 %v894_v46, %v630_v47 }
 0x312   : > { %v648_v50 = vadd.f32 %v895_v48, %v639_v49 }
 0x314   : > { %649 = vst [vmem:[#allocation2] sm:$0xff] %v648_v50  ;;  %v654_v60 = vpack.c.bf16 (!%p896_p2), %v648_v50, %v648_v50 }
 0x316   : > { %995 = vmatmul.mubr.bf16.vlgmr.msra.gmra.mrb[0].mxu0 %v654_v60 }
 0x3e9   : > { %v760_v62 = vpop.f32.mrb[0].mxu0 }
 0x3ea   : > { %v761_v63 = vadd.f32 %v897_v61, %v760_v62  ;;  %v996_v0 = vpop.f32.mrb[1].mxu0 }
 0x3eb   : > { %v763_v1 = vpop.f32.mrb[2].mxu0 }
 0x3ec   : > { %766 = vst [vmem:[#allocation11] sm:$0xff] %v761_v63  ;;  %v997_v2 = vpop.f32.mrb[3].mxu0 }
 0x3ed PF: > { %s1582_s19 = sadd.s32 4294967295, %s1280_s11   ;;  %s1294_s14 = smov [#allocation11]  }
 0x3ee   : > { %p1521_p10 = scmp.eq.s32.totalorder %s1582_s19, 1  ;;  %s776_s20 = sshll.u32 %s1294_s14, 4  ;;  %s777_s20 = int_to_ptr.vmem [resolvable:$true] %s776_s20 }
 0x3ef   : > { %s1216_s15 = scalar_lea.vmem %s777_s20, 128  ;;  %p1223_p6 = scmp.lt.s32.totalorder %s777_s20, %s777_s20 }
 0x3f0   : > { %p1217_p11 = scmp.ne.s32.totalorder %s777_s20, %s1216_s15  ;;  %p1224_p0 = scmp.lt.s32.totalorder %s1216_s15, %s1216_s15 }
 0x3f2   : > { %p1218_p12 = pnand %p1217_p11, %p1521_p10  ;;  %p1225_p1 = por %p1224_p0, %p1223_p6 }
 0x3f4   : > { %p1219_p13 = pneg %p1218_p12 }
 0x3f6   : > { %p1226_p4 = pnand %p1225_p1, %p1219_p13 }
 0x3f8   : > { %1229 = shalt.err (!%p1226_p4)
}
 0x3f9   : > { %s1230_s27 = scalar_lea.hbm %s1565_s9, 128 }
 0x3fa   : > { %p1231_p7 = scmp.ne.s32.totalorder %s1565_s9, %s1230_s27  ;;  %p1236_p8 = scmp.lt.u32.totalorder %s1230_s27, %s1565_s9 }
 0x3fc   : > { %p1232_p9 = pnand %p1231_p7, %p1521_p10 }
 0x3fe   : > { %p1233_p3 = pneg %p1232_p9 }
 0x400   : > { %p1238_p5 = pnand %p1236_p8, %p1233_p3 }
 0x402   : > { %1241 = shalt.err (!%p1238_p5)
}
 0x403   : > { %1015 = dma.vmem_to_hbm [thread:$0]  (%p1521_p10), %s777_s20, 128, %s1565_s9, [#allocation5]  }
 0x404   : > { %1267 = dma.done.wait (%p1521_p10), [#allocation5], 128  }
 0x405   : > { %1269 = vsyncadd (%p1521_p10), [#allocation5], 4294967168 }
 0x406 PF: > { %s23_s11 = sadd.s32 1, %s1280_s11   ;;  %s1584_s30 = sld [smem:[#allocation16_spill]] }
 0x407   : > { %p20_p2 = scmp.ge.s32.totalorder %s23_s11, 4   ;;  %s1585_s10 = smov %s1587_s18 }
 0x409   :  { %22 = sbr.rel (!%p20_p2) target bundleno = 5 (0x5), region = 111 }
 0x410   :  { %789 = vsyncpa [#allocation4], 1 }
 0x411   :  { %791 = vsyncpa [#allocation4 + $0x1], 1 }
 0x412   :  { %792 = vsyncpa [#allocation7], 1 }
 0x413   :  { %793 = vsyncpa [#allocation10], 1 }
 0x414   :  { %794 = vsyncpa [#allocation5], 1 }
 0x415   :  { %796 = vsyncpa [#allocation5 + $0x1], 1 }

</bundles_post_ra>
